<compile_context>
chip_gen: v7x
topology: tpu7x:2x2x1
jax: 0.10.0
libtpu: 0.0.40
codegen_flags: <defaults>
</compile_context>

<pallas_src>
import functools

import numpy as np
import jax
import jax.numpy as jnp
from jax.experimental import pallas as pl
from jax.experimental.pallas import tpu as pltpu

LRELU_SLOPE = 0.2
POOL_OUT = 16     # AdaptiveAvgPool1d(16)
H_DEC = 128       # decoder hidden width (fixed by the module)


# --------------------------------------------------------------------------- #
# Helpers
# --------------------------------------------------------------------------- #
def adaptive_pool_matrix(length, n_out=POOL_OUT):
    """Exact PyTorch AdaptiveAvgPool1d binning as a (n_out, length) matrix."""
    P = np.zeros((n_out, length), dtype=np.float32)
    for j in range(n_out):
        s = (j * length) // n_out                 # floor(j*L/n_out)
        e = -((-(j + 1) * length) // n_out)       # ceil((j+1)*L/n_out)
        P[j, s:e] = 1.0 / float(e - s)
    return jnp.asarray(P)


# --------------------------------------------------------------------------- #
# Pallas kernel 1: fused conv-GEMM + bias + LeakyReLU + adaptive-avg-pool
# --------------------------------------------------------------------------- #
def _frontend_kernel(*refs, n_scales, slope):
    # refs = patches[0..n) , wconv[0..n), bconv[0..n), pool[0..n), out[0..n)
    patches = refs[0:n_scales]
    wconv = refs[n_scales:2 * n_scales]
    bconv = refs[2 * n_scales:3 * n_scales]
    pools = refs[3 * n_scales:4 * n_scales]
    outs = refs[4 * n_scales:5 * n_scales]

    for p_ref, w_ref, b_ref, pm_ref, o_ref in zip(patches, wconv, bconv, pools, outs):
        x = p_ref[0]                                                   # (Tout, K) bf16
        a = jnp.dot(x, w_ref[...], preferred_element_type=jnp.float32)  # MXU, f32 acc
        a = a + b_ref[...]                                             # (Tout, C) f32
        a = jnp.where(a >= 0.0, a, slope * a)                          # LeakyReLU(0.2)
        # exact AdaptiveAvgPool1d(16) as a (16, Tout) x (Tout, C) matmul
        o_ref[0] = jnp.dot(pm_ref[...], a, preferred_element_type=jnp.float32)


def _frontend_call(patches, packed):
    n = len(patches)
    B = patches[0].shape[0]
    C = packed["wconv"][0].shape[1]

    in_specs = []
    args = []
    flops = 0
    bytes_accessed = 0
    for p in patches:
        _, tout, K = p.shape
        in_specs.append(pl.BlockSpec((1, tout, K), lambda b: (b, 0, 0)))
        args.append(p)
        flops += 2 * B * tout * K * C + 2 * B * POOL_OUT * tout * C
        bytes_accessed += int(p.size) * p.dtype.itemsize
    for name in ("wconv", "bconv", "pool"):
        for w in packed[name]:
            in_specs.append(pl.BlockSpec(w.shape, lambda b: (0, 0)))   # resident weights
            args.append(w)
            bytes_accessed += int(w.size) * w.dtype.itemsize
    bytes_accessed += n * B * POOL_OUT * C * 4

    out_shape = tuple(jax.ShapeDtypeStruct((B, POOL_OUT, C), jnp.float32) for _ in range(n))
    out_specs = tuple(pl.BlockSpec((1, POOL_OUT, C), lambda b: (b, 0, 0)) for _ in range(n))

    kernel = functools.partial(_frontend_kernel, n_scales=n, slope=LRELU_SLOPE)
    return pl.pallas_call(
        kernel,
        grid=(B,),
        in_specs=in_specs,
        out_specs=out_specs,
        out_shape=out_shape,
        compiler_params=pltpu.CompilerParams(dimension_semantics=("parallel",)),
        cost_estimate=pl.CostEstimate(
            flops=flops, transcendentals=0, bytes_accessed=bytes_accessed),
    )(*args)


# --------------------------------------------------------------------------- #
# Pallas kernel 2: feature_compress + attention + weighted fusion + decoders
# --------------------------------------------------------------------------- #
def _head_kernel(*refs, n_scales):
    flats = refs[0:n_scales]                       # (B, 16*C) bf16
    wfc = refs[n_scales:2 * n_scales]              # (16*C, F) bf16
    bfc = refs[2 * n_scales:3 * n_scales]          # (1, F)    f32
    wa1 = refs[3 * n_scales:4 * n_scales]          # (F, A)    f32
    (ba1, wa2, ba2, wd1, bd1, wd2, bd2, prob_ref, cont_ref) = refs[4 * n_scales:]

    # per-scale feature_compress
    feats = []
    for f_ref, wfc_ref, bfc_ref in zip(flats, wfc, bfc):
        ff = jnp.dot(f_ref[...], wfc_ref[...], preferred_element_type=jnp.float32)
        feats.append(ff + bfc_ref[...])            # (B, F) f32

    # attention MLP over the (implicitly concatenated) multi-scale features
    h = ba1[...]
    for ft, wa1_ref in zip(feats, wa1):
        h = h + jnp.dot(ft, wa1_ref[...], preferred_element_type=jnp.float32)
    h = jnp.tanh(h)                                                   # (B, A)
    logits = jnp.dot(h, wa2[...], preferred_element_type=jnp.float32) + ba2[...]  # (B, S)
    logits = logits - jnp.max(logits, axis=-1, keepdims=True)
    e = jnp.exp(logits)
    attn = e / jnp.sum(e, axis=-1, keepdims=True)                     # softmax, (B, S)

    # attention-weighted sum of the per-scale features
    weighted = jnp.zeros_like(feats[0])
    for i in range(n_scales):
        weighted = weighted + feats[i] * attn[:, i:i + 1]

    # both decoders fused: first Linears side-by-side, second Linears block-diagonal
    # TODO(synk): nn.Dropout is applied as inference-mode identity; train-mode masking
    #             is not implemented.
    hd = jnp.dot(weighted, wd1[...], preferred_element_type=jnp.float32) + bd1[...]  # (B, 2*128)
    out = jnp.dot(hd, wd2[...], preferred_element_type=jnp.float32) + bd2[...]       # (B, 1+wm)
    out = 1.0 / (1.0 + jnp.exp(-out))                                                # sigmoid

    prob_ref[...] = out[:, 0:1]
    cont_ref[...] = out[:, 1:]


def _head_call(flats, packed):
    n = len(flats)
    B = flats[0].shape[0]
    F = packed["wd1"].shape[0]
    A = packed["ba1"].shape[1]
    n_out = packed["wd2"].shape[1]
    wm = n_out - 1
    kfc = flats[0].shape[1]
    dh = packed["wd1"].shape[1]

    args = (list(flats) + list(packed["wfc"]) + list(packed["bfc"]) + list(packed["wa1"])
            + [packed["ba1"], packed["wa2"], packed["ba2"],
               packed["wd1"], packed["bd1"], packed["wd2"], packed["bd2"]])

    flops = 2 * B * (n * kfc * F + n * F * A + A * n + F * dh + dh * n_out)
    transcendentals = B * (A + n + n_out)
    bytes_accessed = sum(int(a.size) * a.dtype.itemsize for a in args) + B * n_out * 4

    kernel = functools.partial(_head_kernel, n_scales=n)
    # No grid: single invocation, every operand lives whole in VMEM (a few hundred KiB).
    return pl.pallas_call(
        kernel,
        out_shape=(jax.ShapeDtypeStruct((B, 1), jnp.float32),
                   jax.ShapeDtypeStruct((B, wm), jnp.float32)),
        cost_estimate=pl.CostEstimate(
            flops=flops, transcendentals=transcendentals, bytes_accessed=bytes_accessed),
    )(*args)


# --------------------------------------------------------------------------- #
# Parameters: PyTorch-layout init + one-time packing into kernel layouts
# --------------------------------------------------------------------------- #
def init_params(key, cfg):
    sr, ws = cfg["sampling_rate"], cfg["win_sec"]
    C, F, A, WM = cfg["conv_channels"], cfg["feat_dim"], cfg["attn_dim"], cfg["watermark_dim"]
    scales = cfg["scale_factors"]

    def dense(k, shape, fan_in):
        return jax.random.normal(k, shape, jnp.float32) / np.sqrt(float(fan_in))

    params = {"conv": [], "fc": []}
    for s in scales:
        K = int(sr * ws * s)
        key, k1, k2, k3, k4 = jax.random.split(key, 5)
        params["conv"].append((dense(k1, (C, 1, K), K), dense(k2, (C,), K)))
        params["fc"].append((dense(k3, (F, POOL_OUT * C), POOL_OUT * C),
                             dense(k4, (F,), POOL_OUT * C)))
    key, k1, k2, k3, k4 = jax.random.split(key, 5)
    params["attn"] = (dense(k1, (A, len(scales) * F), len(scales) * F), dense(k2, (A,), A),
                      dense(k3, (len(scales), A), A), dense(k4, (len(scales),), A))
    key, k1, k2, k3, k4 = jax.random.split(key, 5)
    params["dec_exist"] = (dense(k1, (H_DEC, F), F), dense(k2, (H_DEC,), F),
                           dense(k3, (1, H_DEC), H_DEC), dense(k4, (1,), H_DEC))
    key, k1, k2, k3, k4 = jax.random.split(key, 5)
    params["dec_content"] = (dense(k1, (H_DEC, F), F), dense(k2, (H_DEC,), F),
                             dense(k3, (WM, H_DEC), H_DEC), dense(k4, (WM,), H_DEC))
    return params


def pack_params(params, cfg, n_samples):
    """One-time packing into kernel-ready layouts (bf16 big GEMM operands)."""
    sr, ws = cfg["sampling_rate"], cfg["win_sec"]
    C, F, A, WM = cfg["conv_channels"], cfg["feat_dim"], cfg["attn_dim"], cfg["watermark_dim"]
    scales = cfg["scale_factors"]
    stride = int(sr * ws * 0.1)

    packed = {"wconv": [], "bconv": [], "pool": [], "wfc": [], "bfc": [], "wa1": []}
    meta = []
    for i, s in enumerate(scales):
        K = int(sr * ws * s)
        pad = int(sr * ws * s // 2)
        tout = (n_samples + 2 * pad - K) // stride + 1
        meta.append((K, stride, pad, tout))

        wc, bc = params["conv"][i]                                     # (C,1,K), (C,)
        packed["wconv"].append(jnp.transpose(wc[:, 0, :], (1, 0)).astype(jnp.bfloat16))  # (K,C)
        packed["bconv"].append(bc.reshape(1, C).astype(jnp.float32))
        packed["pool"].append(adaptive_pool_matrix(tout))              # (16, Tout) f32

        wf, bf = params["fc"][i]                                       # (F, 16*C), (F,)
        # kernel flatten order is (pool_idx j, channel c); PyTorch's view order is (c, j)
        wf_p = jnp.transpose(wf.reshape(F, C, POOL_OUT), (2, 1, 0)).reshape(POOL_OUT * C, F)
        packed["wfc"].append(wf_p.astype(jnp.bfloat16))
        packed["bfc"].append(bf.reshape(1, F).astype(jnp.float32))

    wa1, ba1, wa2, ba2 = params["attn"]
    for i in range(len(scales)):
        packed["wa1"].append(jnp.transpose(wa1[:, i * F:(i + 1) * F]))  # (F, A)
    packed["ba1"] = ba1.reshape(1, A)
    packed["wa2"] = jnp.transpose(wa2)                                  # (A, n_scales)
    packed["ba2"] = ba2.reshape(1, len(scales))

    we1, be1, we2, be2 = params["dec_exist"]
    wc1, bc1, wc2, bc2 = params["dec_content"]
    packed["wd1"] = jnp.concatenate([we1.T, wc1.T], axis=1)             # (F, 2*128)
    packed["bd1"] = jnp.concatenate([be1, bc1]).reshape(1, 2 * H_DEC)
    wd2 = jnp.zeros((2 * H_DEC, 1 + WM), jnp.float32)
    wd2 = wd2.at[:H_DEC, 0:1].set(we2.T)
    wd2 = wd2.at[H_DEC:, 1:].set(wc2.T)
    packed["wd2"] = wd2                                                 # block-diagonal
    packed["bd2"] = jnp.concatenate([be2, bc2]).reshape(1, 1 + WM)
    return packed, tuple(meta)


# --------------------------------------------------------------------------- #
# Forward pass (2 pallas_calls + tiny JAX glue)
# --------------------------------------------------------------------------- #
def watermark_forward(packed, x, *, meta, cfg):
    B = x.shape[0]
    C = cfg["conv_channels"]

    x1 = x[:, 0, :].astype(jnp.bfloat16)          # bf16 MXU operands, halves gather bytes
    patches = []
    for (K, stride, pad, tout) in meta:
        xp = jnp.pad(x1, ((0, 0), (pad, pad)))    # Conv1d default zero padding
        idx = jnp.arange(tout)[:, None] * stride + jnp.arange(K)[None, :]
        patches.append(xp[:, idx])                # (B, Tout, K) bf16

    pooled = _frontend_call(patches, packed)      # n_scales x (B, 16, C) f32
    flats = [p.reshape(B, POOL_OUT * C).astype(jnp.bfloat16) for p in pooled]
    prob, cont = _head_call(flats, packed)
    return prob, cont


# --------------------------------------------------------------------------- #
# Pure-JAX reference (PyTorch-layout params, f32) for a correctness check
# --------------------------------------------------------------------------- #
def reference_forward(params, x, cfg):
    sr, ws = cfg["sampling_rate"], cfg["win_sec"]
    scales = cfg["scale_factors"]
    stride = int(sr * ws * 0.1)
    B = x.shape[0]

    feats = []
    for i, s in enumerate(scales):
        K = int(sr * ws * s)
        pad = int(sr * ws * s // 2)
        wc, bc = params["conv"][i]
        y = jax.lax.conv_general_dilated(x, wc, (stride,), [(pad, pad)],
                                         dimension_numbers=("NCH", "OIH", "NCH"))
        y = y + bc[None, :, None]
        y = jnp.where(y >= 0, y, LRELU_SLOPE * y)
        P = adaptive_pool_matrix(y.shape[-1])
        pooled = jnp.einsum("jt,bct->bcj", P, y)           # (B, C, 16)
        flat = pooled.reshape(B, -1)                       # PyTorch view order (c, j)
        wf, bf = params["fc"][i]
        feats.append(flat @ wf.T + bf)

    msf = jnp.concatenate(feats, axis=-1)
    wa1, ba1, wa2, ba2 = params["attn"]
    h = jnp.tanh(msf @ wa1.T + ba1)
    attn = jax.nn.softmax(h @ wa2.T + ba2, axis=-1)
    weighted = sum(feats[i] * attn[:, i:i + 1] for i in range(len(scales)))

    we1, be1, we2, be2 = params["dec_exist"]
    wc1, bc1, wc2, bc2 = params["dec_content"]
    prob = jax.nn.sigmoid((weighted @ we1.T + be1) @ we2.T + be2)
    cont = jax.nn.sigmoid((weighted @ wc1.T + bc1) @ wc2.T + bc2)
    return prob, cont


# --------------------------------------------------------------------------- #
if __name__ == "__main__":
    # Scaled-down hyperparams (AttrDict equivalents) so shapes stay small:
    # kernel sizes 40/80/160, stride 8, padding 20/40/80, Tout=101 per scale.
    cfg = {
        "sampling_rate": 800,
        "watermark_dim": 32,
        "win_sec": 0.1,
        "feat_dim": 128,
        "scale_factors": [0.5, 1.0, 2.0],
        "conv_channels": 32,
        "attn_dim": 256,
        "dropout_rate": 0.3,
    }
    B, n_samples = 2, 800

    key = jax.random.PRNGKey(0)
    k_params, k_x = jax.random.split(key)
    params = init_params(k_params, cfg)
    packed, meta = pack_params(params, cfg, n_samples)
    x = jax.random.normal(k_x, (B, 1, n_samples), jnp.float32)

    fwd = jax.jit(functools.partial(watermark_forward, meta=meta, cfg=cfg))
    prob, cont = fwd(packed, x)
    prob, cont = jax.block_until_ready((prob, cont))

    assert prob.shape == (B, 1) and cont.shape == (B, cfg["watermark_dim"])

    prob_ref, cont_ref = reference_forward(params, x, cfg)
    err = max(float(jnp.max(jnp.abs(prob - prob_ref))),
              float(jnp.max(jnp.abs(cont - cont_ref))))
    if err > 5e-2:
        raise SystemExit(f"numerical mismatch vs reference: max abs err {err:.4f}")

    print("KERNEL_OK")
</pallas_src>

<mosaic_0001>
module attributes {stable_mosaic.version = 11 : i64} {
  func.func @_frontend_kernel(%arg0: i32, %arg1: memref<1x101x40xbf16, #tpu.memory_space<vmem>>, %arg2: memref<1x101x80xbf16, #tpu.memory_space<vmem>>, %arg3: memref<1x101x160xbf16, #tpu.memory_space<vmem>>, %arg4: memref<40x32xbf16, #tpu.memory_space<vmem>>, %arg5: memref<80x32xbf16, #tpu.memory_space<vmem>>, %arg6: memref<160x32xbf16, #tpu.memory_space<vmem>>, %arg7: memref<1x32xf32, #tpu.memory_space<vmem>>, %arg8: memref<1x32xf32, #tpu.memory_space<vmem>>, %arg9: memref<1x32xf32, #tpu.memory_space<vmem>>, %arg10: memref<16x101xf32, #tpu.memory_space<vmem>>, %arg11: memref<16x101xf32, #tpu.memory_space<vmem>>, %arg12: memref<16x101xf32, #tpu.memory_space<vmem>>, %arg13: memref<1x16x32xf32, #tpu.memory_space<vmem>>, %arg14: memref<1x16x32xf32, #tpu.memory_space<vmem>>, %arg15: memref<1x16x32xf32, #tpu.memory_space<vmem>>) attributes {dimension_semantics = [#tpu.dimension_semantics<parallel>], iteration_bounds = array<i64: 2>, scalar_prefetch = 0 : i64, scratch_operands = 0 : i64, tpu.core_type = #tpu.core_type<tc>, window_params = [{transform_indices = @transform_0, window_bounds = array<i64: 1, 101, 40>}, {transform_indices = @transform_1, window_bounds = array<i64: 1, 101, 80>}, {transform_indices = @transform_2, window_bounds = array<i64: 1, 101, 160>}, {pipeline_mode = #tpu.pipeline_mode<synchronous>, transform_indices = @transform_3, window_bounds = array<i64: 40, 32>}, {pipeline_mode = #tpu.pipeline_mode<synchronous>, transform_indices = @transform_4, window_bounds = array<i64: 80, 32>}, {pipeline_mode = #tpu.pipeline_mode<synchronous>, transform_indices = @transform_5, window_bounds = array<i64: 160, 32>}, {pipeline_mode = #tpu.pipeline_mode<synchronous>, transform_indices = @transform_6, window_bounds = array<i64: 1, 32>}, {pipeline_mode = #tpu.pipeline_mode<synchronous>, transform_indices = @transform_7, window_bounds = array<i64: 1, 32>}, {pipeline_mode = #tpu.pipeline_mode<synchronous>, transform_indices = @transform_8, window_bounds = array<i64: 1, 32>}, {pipeline_mode = #tpu.pipeline_mode<synchronous>, transform_indices = @transform_9, window_bounds = array<i64: 16, 101>}, {pipeline_mode = #tpu.pipeline_mode<synchronous>, transform_indices = @transform_10, window_bounds = array<i64: 16, 101>}, {pipeline_mode = #tpu.pipeline_mode<synchronous>, transform_indices = @transform_11, window_bounds = array<i64: 16, 101>}, {transform_indices = @transform_12, window_bounds = array<i64: 1, 16, 32>}, {transform_indices = @transform_13, window_bounds = array<i64: 1, 16, 32>}, {transform_indices = @transform_14, window_bounds = array<i64: 1, 16, 32>}]} {
    %c0 = arith.constant 0 : index
    %c0_0 = arith.constant 0 : index
    %c0_1 = arith.constant 0 : index
    %0 = vector.load %arg1[%c0, %c0_0, %c0_1] : memref<1x101x40xbf16, #tpu.memory_space<vmem>>, vector<1x101x40xbf16>
    %1 = vector.shape_cast %0 : vector<1x101x40xbf16> to vector<101x40xbf16>
    %c0_2 = arith.constant 0 : index
    %c0_3 = arith.constant 0 : index
    %2 = vector.load %arg4[%c0_2, %c0_3] : memref<40x32xbf16, #tpu.memory_space<vmem>>, vector<40x32xbf16>
    %cst = arith.constant dense<0.000000e+00> : vector<101x32xf32>
    %3 = tpu.matmul %1, %2, %cst {dimension_numbers = #tpu.dot_dimension_numbers<[1], [0], [0], [1], [0, 0, 1, 1], [], []>} : vector<101x40xbf16>, vector<40x32xbf16>, vector<101x32xf32> -> vector<101x32xf32>
    %c0_4 = arith.constant 0 : index
    %c0_5 = arith.constant 0 : index
    %4 = vector.load %arg7[%c0_4, %c0_5] : memref<1x32xf32, #tpu.memory_space<vmem>>, vector<1x32xf32>
    %5 = vector.broadcast %4 : vector<1x32xf32> to vector<101x32xf32>
    %6 = arith.addf %3, %5 : vector<101x32xf32>
    %cst_6 = arith.constant 0.000000e+00 : f32
    %7 = vector.broadcast %cst_6 : f32 to vector<101x32xf32>
    %8 = arith.cmpf oge, %6, %7 : vector<101x32xf32>
    %cst_7 = arith.constant 2.000000e-01 : f32
    %9 = vector.broadcast %cst_7 : f32 to vector<101x32xf32>
    %10 = arith.mulf %9, %6 : vector<101x32xf32>
    %11 = arith.select %8, %6, %10 : vector<101x32xi1>, vector<101x32xf32>
    %c0_8 = arith.constant 0 : index
    %c0_9 = arith.constant 0 : index
    %12 = vector.load %arg10[%c0_8, %c0_9] : memref<16x101xf32, #tpu.memory_space<vmem>>, vector<16x101xf32>
    %cst_10 = arith.constant dense<0.000000e+00> : vector<16x32xf32>
    %13 = tpu.matmul %12, %11, %cst_10 {dimension_numbers = #tpu.dot_dimension_numbers<[1], [0], [0], [1], [0, 0, 1, 1], [], []>} : vector<16x101xf32>, vector<101x32xf32>, vector<16x32xf32> -> vector<16x32xf32>
    %c0_11 = arith.constant 0 : index
    %c0_12 = arith.constant 0 : index
    %c0_13 = arith.constant 0 : index
    %14 = vector.load %arg13[%c0_11, %c0_12, %c0_13] : memref<1x16x32xf32, #tpu.memory_space<vmem>>, vector<1x16x32xf32>
    %15 = vector.shape_cast %14 : vector<1x16x32xf32> to vector<16x32xf32>
    %16 = vector.shape_cast %13 : vector<16x32xf32> to vector<1x16x32xf32>
    tpu.vector_store %arg13[%c0_11, %c0_12, %c0_13], %16 {strides = array<i32>} : memref<1x16x32xf32, #tpu.memory_space<vmem>>, vector<1x16x32xf32>,
    %c0_14 = arith.constant 0 : index
    %c0_15 = arith.constant 0 : index
    %c0_16 = arith.constant 0 : index
    %17 = vector.load %arg2[%c0_14, %c0_15, %c0_16] : memref<1x101x80xbf16, #tpu.memory_space<vmem>>, vector<1x101x80xbf16>
    %18 = vector.shape_cast %17 : vector<1x101x80xbf16> to vector<101x80xbf16>
    %c0_17 = arith.constant 0 : index
    %c0_18 = arith.constant 0 : index
    %19 = vector.load %arg5[%c0_17, %c0_18] : memref<80x32xbf16, #tpu.memory_space<vmem>>, vector<80x32xbf16>
    %cst_19 = arith.constant dense<0.000000e+00> : vector<101x32xf32>
    %20 = tpu.matmul %18, %19, %cst_19 {dimension_numbers = #tpu.dot_dimension_numbers<[1], [0], [0], [1], [0, 0, 1, 1], [], []>} : vector<101x80xbf16>, vector<80x32xbf16>, vector<101x32xf32> -> vector<101x32xf32>
    %c0_20 = arith.constant 0 : index
    %c0_21 = arith.constant 0 : index
    %21 = vector.load %arg8[%c0_20, %c0_21] : memref<1x32xf32, #tpu.memory_space<vmem>>, vector<1x32xf32>
    %22 = vector.broadcast %21 : vector<1x32xf32> to vector<101x32xf32>
    %23 = arith.addf %20, %22 : vector<101x32xf32>
    %cst_22 = arith.constant 0.000000e+00 : f32
    %24 = vector.broadcast %cst_22 : f32 to vector<101x32xf32>
    %25 = arith.cmpf oge, %23, %24 : vector<101x32xf32>
    %cst_23 = arith.constant 2.000000e-01 : f32
    %26 = vector.broadcast %cst_23 : f32 to vector<101x32xf32>
    %27 = arith.mulf %26, %23 : vector<101x32xf32>
    %28 = arith.select %25, %23, %27 : vector<101x32xi1>, vector<101x32xf32>
    %c0_24 = arith.constant 0 : index
    %c0_25 = arith.constant 0 : index
    %29 = vector.load %arg11[%c0_24, %c0_25] : memref<16x101xf32, #tpu.memory_space<vmem>>, vector<16x101xf32>
    %cst_26 = arith.constant dense<0.000000e+00> : vector<16x32xf32>
    %30 = tpu.matmul %29, %28, %cst_26 {dimension_numbers = #tpu.dot_dimension_numbers<[1], [0], [0], [1], [0, 0, 1, 1], [], []>} : vector<16x101xf32>, vector<101x32xf32>, vector<16x32xf32> -> vector<16x32xf32>
    %c0_27 = arith.constant 0 : index
    %c0_28 = arith.constant 0 : index
    %c0_29 = arith.constant 0 : index
    %31 = vector.load %arg14[%c0_27, %c0_28, %c0_29] : memref<1x16x32xf32, #tpu.memory_space<vmem>>, vector<1x16x32xf32>
    %32 = vector.shape_cast %31 : vector<1x16x32xf32> to vector<16x32xf32>
    %33 = vector.shape_cast %30 : vector<16x32xf32> to vector<1x16x32xf32>
    tpu.vector_store %arg14[%c0_27, %c0_28, %c0_29], %33 {strides = array<i32>} : memref<1x16x32xf32, #tpu.memory_space<vmem>>, vector<1x16x32xf32>,
    %c0_30 = arith.constant 0 : index
    %c0_31 = arith.constant 0 : index
    %c0_32 = arith.constant 0 : index
    %34 = vector.load %arg3[%c0_30, %c0_31, %c0_32] : memref<1x101x160xbf16, #tpu.memory_space<vmem>>, vector<1x101x160xbf16>
    %35 = vector.shape_cast %34 : vector<1x101x160xbf16> to vector<101x160xbf16>
    %c0_33 = arith.constant 0 : index
    %c0_34 = arith.constant 0 : index
    %36 = vector.load %arg6[%c0_33, %c0_34] : memref<160x32xbf16, #tpu.memory_space<vmem>>, vector<160x32xbf16>
    %cst_35 = arith.constant dense<0.000000e+00> : vector<101x32xf32>
    %37 = tpu.matmul %35, %36, %cst_35 {dimension_numbers = #tpu.dot_dimension_numbers<[1], [0], [0], [1], [0, 0, 1, 1], [], []>} : vector<101x160xbf16>, vector<160x32xbf16>, vector<101x32xf32> -> vector<101x32xf32>
    %c0_36 = arith.constant 0 : index
    %c0_37 = arith.constant 0 : index
    %38 = vector.load %arg9[%c0_36, %c0_37] : memref<1x32xf32, #tpu.memory_space<vmem>>, vector<1x32xf32>
    %39 = vector.broadcast %38 : vector<1x32xf32> to vector<101x32xf32>
    %40 = arith.addf %37, %39 : vector<101x32xf32>
    %cst_38 = arith.constant 0.000000e+00 : f32
    %41 = vector.broadcast %cst_38 : f32 to vector<101x32xf32>
    %42 = arith.cmpf oge, %40, %41 : vector<101x32xf32>
    %cst_39 = arith.constant 2.000000e-01 : f32
    %43 = vector.broadcast %cst_39 : f32 to vector<101x32xf32>
    %44 = arith.mulf %43, %40 : vector<101x32xf32>
    %45 = arith.select %42, %40, %44 : vector<101x32xi1>, vector<101x32xf32>
    %c0_40 = arith.constant 0 : index
    %c0_41 = arith.constant 0 : index
    %46 = vector.load %arg12[%c0_40, %c0_41] : memref<16x101xf32, #tpu.memory_space<vmem>>, vector<16x101xf32>
    %cst_42 = arith.constant dense<0.000000e+00> : vector<16x32xf32>
    %47 = tpu.matmul %46, %45, %cst_42 {dimension_numbers = #tpu.dot_dimension_numbers<[1], [0], [0], [1], [0, 0, 1, 1], [], []>} : vector<16x101xf32>, vector<101x32xf32>, vector<16x32xf32> -> vector<16x32xf32>
    %c0_43 = arith.constant 0 : index
    %c0_44 = arith.constant 0 : index
    %c0_45 = arith.constant 0 : index
    %48 = vector.load %arg15[%c0_43, %c0_44, %c0_45] : memref<1x16x32xf32, #tpu.memory_space<vmem>>, vector<1x16x32xf32>
    %49 = vector.shape_cast %48 : vector<1x16x32xf32> to vector<16x32xf32>
    %50 = vector.shape_cast %47 : vector<16x32xf32> to vector<1x16x32xf32>
    tpu.vector_store %arg15[%c0_43, %c0_44, %c0_45], %50 {strides = array<i32>} : memref<1x16x32xf32, #tpu.memory_space<vmem>>, vector<1x16x32xf32>,
    return
  }
  func.func @transform_0(%arg0: i32) -> (i32, i32, i32) {
    %c0_i32 = arith.constant 0 : i32
    %c0_i32_0 = arith.constant 0 : i32
    %c0_i32_1 = arith.constant 0 : i32
    return %arg0, %c0_i32, %c0_i32_0 : i32, i32, i32
  }
  func.func @transform_1(%arg0: i32) -> (i32, i32, i32) {
    %c0_i32 = arith.constant 0 : i32
    %c0_i32_0 = arith.constant 0 : i32
    %c0_i32_1 = arith.constant 0 : i32
    return %arg0, %c0_i32, %c0_i32_0 : i32, i32, i32
  }
  func.func @transform_2(%arg0: i32) -> (i32, i32, i32) {
    %c0_i32 = arith.constant 0 : i32
    %c0_i32_0 = arith.constant 0 : i32
    %c0_i32_1 = arith.constant 0 : i32
    return %arg0, %c0_i32, %c0_i32_0 : i32, i32, i32
  }
  func.func @transform_3(%arg0: i32) -> (i32, i32) {
    %c0_i32 = arith.constant 0 : i32
    %c0_i32_0 = arith.constant 0 : i32
    %c0_i32_1 = arith.constant 0 : i32
    return %c0_i32, %c0_i32_0 : i32, i32
  }
  func.func @transform_4(%arg0: i32) -> (i32, i32) {
    %c0_i32 = arith.constant 0 : i32
    %c0_i32_0 = arith.constant 0 : i32
    %c0_i32_1 = arith.constant 0 : i32
    return %c0_i32, %c0_i32_0 : i32, i32
  }
  func.func @transform_5(%arg0: i32) -> (i32, i32) {
    %c0_i32 = arith.constant 0 : i32
    %c0_i32_0 = arith.constant 0 : i32
    %c0_i32_1 = arith.constant 0 : i32
    return %c0_i32, %c0_i32_0 : i32, i32
  }
  func.func @transform_6(%arg0: i32) -> (i32, i32) {
    %c0_i32 = arith.constant 0 : i32
    %c0_i32_0 = arith.constant 0 : i32
    %c0_i32_1 = arith.constant 0 : i32
    return %c0_i32, %c0_i32_0 : i32, i32
  }
  func.func @transform_7(%arg0: i32) -> (i32, i32) {
    %c0_i32 = arith.constant 0 : i32
    %c0_i32_0 = arith.constant 0 : i32
    %c0_i32_1 = arith.constant 0 : i32
    return %c0_i32, %c0_i32_0 : i32, i32
  }
  func.func @transform_8(%arg0: i32) -> (i32, i32) {
    %c0_i32 = arith.constant 0 : i32
    %c0_i32_0 = arith.constant 0 : i32
    %c0_i32_1 = arith.constant 0 : i32
    return %c0_i32, %c0_i32_0 : i32, i32
  }
  func.func @transform_9(%arg0: i32) -> (i32, i32) {
    %c0_i32 = arith.constant 0 : i32
    %c0_i32_0 = arith.constant 0 : i32
    %c0_i32_1 = arith.constant 0 : i32
    return %c0_i32, %c0_i32_0 : i32, i32
  }
  func.func @transform_10(%arg0: i32) -> (i32, i32) {
    %c0_i32 = arith.constant 0 : i32
    %c0_i32_0 = arith.constant 0 : i32
    %c0_i32_1 = arith.constant 0 : i32
    return %c0_i32, %c0_i32_0 : i32, i32
  }
  func.func @transform_11(%arg0: i32) -> (i32, i32) {
    %c0_i32 = arith.constant 0 : i32
    %c0_i32_0 = arith.constant 0 : i32
    %c0_i32_1 = arith.constant 0 : i32
    return %c0_i32, %c0_i32_0 : i32, i32
  }
  func.func @transform_12(%arg0: i32) -> (i32, i32, i32) {
    %c0_i32 = arith.constant 0 : i32
    %c0_i32_0 = arith.constant 0 : i32
    %c0_i32_1 = arith.constant 0 : i32
    return %arg0, %c0_i32, %c0_i32_0 : i32, i32, i32
  }
  func.func @transform_13(%arg0: i32) -> (i32, i32, i32) {
    %c0_i32 = arith.constant 0 : i32
    %c0_i32_0 = arith.constant 0 : i32
    %c0_i32_1 = arith.constant 0 : i32
    return %arg0, %c0_i32, %c0_i32_0 : i32, i32, i32
  }
  func.func @transform_14(%arg0: i32) -> (i32, i32, i32) {
    %c0_i32 = arith.constant 0 : i32
    %c0_i32_0 = arith.constant 0 : i32
    %c0_i32_1 = arith.constant 0 : i32
    return %arg0, %c0_i32, %c0_i32_0 : i32, i32, i32
  }
}

module attributes {stable_mosaic.version = 11 : i64} {
  func.func @_head_kernel(%arg0: memref<2x512xbf16, #tpu.memory_space<vmem>>, %arg1: memref<2x512xbf16, #tpu.memory_space<vmem>>, %arg2: memref<2x512xbf16, #tpu.memory_space<vmem>>, %arg3: memref<512x128xbf16, #tpu.memory_space<vmem>>, %arg4: memref<512x128xbf16, #tpu.memory_space<vmem>>, %arg5: memref<512x128xbf16, #tpu.memory_space<vmem>>, %arg6: memref<1x128xf32, #tpu.memory_space<vmem>>, %arg7: memref<1x128xf32, #tpu.memory_space<vmem>>, %arg8: memref<1x128xf32, #tpu.memory_space<vmem>>, %arg9: memref<128x256xf32, #tpu.memory_space<vmem>>, %arg10: memref<128x256xf32, #tpu.memory_space<vmem>>, %arg11: memref<128x256xf32, #tpu.memory_space<vmem>>, %arg12: memref<1x256xf32, #tpu.memory_space<vmem>>, %arg13: memref<256x3xf32, #tpu.memory_space<vmem>>, %arg14: memref<1x3xf32, #tpu.memory_space<vmem>>, %arg15: memref<128x256xf32, #tpu.memory_space<vmem>>, %arg16: memref<1x256xf32, #tpu.memory_space<vmem>>, %arg17: memref<256x33xf32, #tpu.memory_space<vmem>>, %arg18: memref<1x33xf32, #tpu.memory_space<vmem>>, %arg19: memref<2x1xf32, #tpu.memory_space<vmem>>, %arg20: memref<2x32xf32, #tpu.memory_space<vmem>>) attributes {dimension_semantics = [], scalar_prefetch = 0 : i64, scratch_operands = 0 : i64, tpu.core_type = #tpu.core_type<tc>} {
    %c0 = arith.constant 0 : index
    %c0_0 = arith.constant 0 : index
    %0 = vector.load %arg0[%c0, %c0_0] : memref<2x512xbf16, #tpu.memory_space<vmem>>, vector<2x512xbf16>
    %c0_1 = arith.constant 0 : index
    %c0_2 = arith.constant 0 : index
    %1 = vector.load %arg3[%c0_1, %c0_2] : memref<512x128xbf16, #tpu.memory_space<vmem>>, vector<512x128xbf16>
    %cst = arith.constant dense<0.000000e+00> : vector<2x128xf32>
    %2 = tpu.matmul %0, %1, %cst {dimension_numbers = #tpu.dot_dimension_numbers<[1], [0], [0], [1], [0, 0, 1, 1], [], []>} : vector<2x512xbf16>, vector<512x128xbf16>, vector<2x128xf32> -> vector<2x128xf32>
    %c0_3 = arith.constant 0 : index
    %c0_4 = arith.constant 0 : index
    %3 = vector.load %arg6[%c0_3, %c0_4] : memref<1x128xf32, #tpu.memory_space<vmem>>, vector<1x128xf32>
    %4 = vector.broadcast %3 : vector<1x128xf32> to vector<2x128xf32>
    %5 = arith.addf %2, %4 : vector<2x128xf32>
    %c0_5 = arith.constant 0 : index
    %c0_6 = arith.constant 0 : index
    %6 = vector.load %arg1[%c0_5, %c0_6] : memref<2x512xbf16, #tpu.memory_space<vmem>>, vector<2x512xbf16>
    %c0_7 = arith.constant 0 : index
    %c0_8 = arith.constant 0 : index
    %7 = vector.load %arg4[%c0_7, %c0_8] : memref<512x128xbf16, #tpu.memory_space<vmem>>, vector<512x128xbf16>
    %cst_9 = arith.constant dense<0.000000e+00> : vector<2x128xf32>
    %8 = tpu.matmul %6, %7, %cst_9 {dimension_numbers = #tpu.dot_dimension_numbers<[1], [0], [0], [1], [0, 0, 1, 1], [], []>} : vector<2x512xbf16>, vector<512x128xbf16>, vector<2x128xf32> -> vector<2x128xf32>
    %c0_10 = arith.constant 0 : index
    %c0_11 = arith.constant 0 : index
    %9 = vector.load %arg7[%c0_10, %c0_11] : memref<1x128xf32, #tpu.memory_space<vmem>>, vector<1x128xf32>
    %10 = vector.broadcast %9 : vector<1x128xf32> to vector<2x128xf32>
    %11 = arith.addf %8, %10 : vector<2x128xf32>
    %c0_12 = arith.constant 0 : index
    %c0_13 = arith.constant 0 : index
    %12 = vector.load %arg2[%c0_12, %c0_13] : memref<2x512xbf16, #tpu.memory_space<vmem>>, vector<2x512xbf16>
    %c0_14 = arith.constant 0 : index
    %c0_15 = arith.constant 0 : index
    %13 = vector.load %arg5[%c0_14, %c0_15] : memref<512x128xbf16, #tpu.memory_space<vmem>>, vector<512x128xbf16>
    %cst_16 = arith.constant dense<0.000000e+00> : vector<2x128xf32>
    %14 = tpu.matmul %12, %13, %cst_16 {dimension_numbers = #tpu.dot_dimension_numbers<[1], [0], [0], [1], [0, 0, 1, 1], [], []>} : vector<2x512xbf16>, vector<512x128xbf16>, vector<2x128xf32> -> vector<2x128xf32>
    %c0_17 = arith.constant 0 : index
    %c0_18 = arith.constant 0 : index
    %15 = vector.load %arg8[%c0_17, %c0_18] : memref<1x128xf32, #tpu.memory_space<vmem>>, vector<1x128xf32>
    %16 = vector.broadcast %15 : vector<1x128xf32> to vector<2x128xf32>
    %17 = arith.addf %14, %16 : vector<2x128xf32>
    %c0_19 = arith.constant 0 : index
    %c0_20 = arith.constant 0 : index
    %18 = vector.load %arg12[%c0_19, %c0_20] : memref<1x256xf32, #tpu.memory_space<vmem>>, vector<1x256xf32>
    %c0_21 = arith.constant 0 : index
    %c0_22 = arith.constant 0 : index
    %19 = vector.load %arg9[%c0_21, %c0_22] : memref<128x256xf32, #tpu.memory_space<vmem>>, vector<128x256xf32>
    %cst_23 = arith.constant dense<0.000000e+00> : vector<2x256xf32>
    %20 = tpu.matmul %5, %19, %cst_23 {dimension_numbers = #tpu.dot_dimension_numbers<[1], [0], [0], [1], [0, 0, 1, 1], [], []>} : vector<2x128xf32>, vector<128x256xf32>, vector<2x256xf32> -> vector<2x256xf32>
    %21 = vector.broadcast %18 : vector<1x256xf32> to vector<2x256xf32>
    %22 = arith.addf %21, %20 : vector<2x256xf32>
    %c0_24 = arith.constant 0 : index
    %c0_25 = arith.constant 0 : index
    %23 = vector.load %arg10[%c0_24, %c0_25] : memref<128x256xf32, #tpu.memory_space<vmem>>, vector<128x256xf32>
    %cst_26 = arith.constant dense<0.000000e+00> : vector<2x256xf32>
    %24 = tpu.matmul %11, %23, %cst_26 {dimension_numbers = #tpu.dot_dimension_numbers<[1], [0], [0], [1], [0, 0, 1, 1], [], []>} : vector<2x128xf32>, vector<128x256xf32>, vector<2x256xf32> -> vector<2x256xf32>
    %25 = arith.addf %22, %24 : vector<2x256xf32>
    %c0_27 = arith.constant 0 : index
    %c0_28 = arith.constant 0 : index
    %26 = vector.load %arg11[%c0_27, %c0_28] : memref<128x256xf32, #tpu.memory_space<vmem>>, vector<128x256xf32>
    %cst_29 = arith.constant dense<0.000000e+00> : vector<2x256xf32>
    %27 = tpu.matmul %17, %26, %cst_29 {dimension_numbers = #tpu.dot_dimension_numbers<[1], [0], [0], [1], [0, 0, 1, 1], [], []>} : vector<2x128xf32>, vector<128x256xf32>, vector<2x256xf32> -> vector<2x256xf32>
    %28 = arith.addf %25, %27 : vector<2x256xf32>
    %29 = math.tanh %28 : vector<2x256xf32>
    %c0_30 = arith.constant 0 : index
    %c0_31 = arith.constant 0 : index
    %30 = vector.load %arg13[%c0_30, %c0_31] : memref<256x3xf32, #tpu.memory_space<vmem>>, vector<256x3xf32>
    %cst_32 = arith.constant dense<0.000000e+00> : vector<2x3xf32>
    %31 = tpu.matmul %29, %30, %cst_32 {dimension_numbers = #tpu.dot_dimension_numbers<[1], [0], [0], [1], [0, 0, 1, 1], [], []>} : vector<2x256xf32>, vector<256x3xf32>, vector<2x3xf32> -> vector<2x3xf32>
    %c0_33 = arith.constant 0 : index
    %c0_34 = arith.constant 0 : index
    %32 = vector.load %arg14[%c0_33, %c0_34] : memref<1x3xf32, #tpu.memory_space<vmem>>, vector<1x3xf32>
    %33 = vector.broadcast %32 : vector<1x3xf32> to vector<2x3xf32>
    %34 = arith.addf %31, %33 : vector<2x3xf32>
    %cst_35 = arith.constant dense<0xFF800000> : vector<2xf32>
    %35 = vector.multi_reduction <maximumf>, %34, %cst_35 [1] : vector<2x3xf32> to vector<2xf32>
    %36 = vector.shape_cast %35 : vector<2xf32> to vector<2x1xf32>
    %37 = vector.broadcast %36 : vector<2x1xf32> to vector<2x3xf32>
    %38 = arith.subf %34, %37 : vector<2x3xf32>
    %39 = math.exp %38 : vector<2x3xf32>
    %cst_36 = arith.constant dense<0.000000e+00> : vector<2xf32>
    %40 = vector.multi_reduction <add>, %39, %cst_36 [1] : vector<2x3xf32> to vector<2xf32>
    %41 = vector.shape_cast %40 : vector<2xf32> to vector<2x1xf32>
    %42 = vector.broadcast %41 : vector<2x1xf32> to vector<2x3xf32>
    %43 = arith.divf %39, %42 : vector<2x3xf32>
    %cst_37 = arith.constant 0.000000e+00 : f32
    %44 = vector.broadcast %cst_37 : f32 to vector<2x128xf32>
    %45 = vector.extract_strided_slice %43 {offsets = [0, 0], sizes = [2, 1], strides = [1, 1]} : vector<2x3xf32> to vector<2x1xf32>
    %46 = vector.broadcast %45 : vector<2x1xf32> to vector<2x128xf32>
    %47 = arith.mulf %5, %46 : vector<2x128xf32>
    %48 = arith.addf %44, %47 : vector<2x128xf32>
    %49 = vector.extract_strided_slice %43 {offsets = [0, 1], sizes = [2, 1], strides = [1, 1]} : vector<2x3xf32> to vector<2x1xf32>
    %50 = vector.broadcast %49 : vector<2x1xf32> to vector<2x128xf32>
    %51 = arith.mulf %11, %50 : vector<2x128xf32>
    %52 = arith.addf %48, %51 : vector<2x128xf32>
    %53 = vector.extract_strided_slice %43 {offsets = [0, 2], sizes = [2, 1], strides = [1, 1]} : vector<2x3xf32> to vector<2x1xf32>
    %54 = vector.broadcast %53 : vector<2x1xf32> to vector<2x128xf32>
    %55 = arith.mulf %17, %54 : vector<2x128xf32>
    %56 = arith.addf %52, %55 : vector<2x128xf32>
    %c0_38 = arith.constant 0 : index
    %c0_39 = arith.constant 0 : index
    %57 = vector.load %arg15[%c0_38, %c0_39] : memref<128x256xf32, #tpu.memory_space<vmem>>, vector<128x256xf32>
    %cst_40 = arith.constant dense<0.000000e+00> : vector<2x256xf32>
    %58 = tpu.matmul %56, %57, %cst_40 {dimension_numbers = #tpu.dot_dimension_numbers<[1], [0], [0], [1], [0, 0, 1, 1], [], []>} : vector<2x128xf32>, vector<128x256xf32>, vector<2x256xf32> -> vector<2x256xf32>
    %c0_41 = arith.constant 0 : index
    %c0_42 = arith.constant 0 : index
    %59 = vector.load %arg16[%c0_41, %c0_42] : memref<1x256xf32, #tpu.memory_space<vmem>>, vector<1x256xf32>
    %60 = vector.broadcast %59 : vector<1x256xf32> to vector<2x256xf32>
    %61 = arith.addf %58, %60 : vector<2x256xf32>
    %c0_43 = arith.constant 0 : index
    %c0_44 = arith.constant 0 : index
    %62 = vector.load %arg17[%c0_43, %c0_44] : memref<256x33xf32, #tpu.memory_space<vmem>>, vector<256x33xf32>
    %cst_45 = arith.constant dense<0.000000e+00> : vector<2x33xf32>
    %63 = tpu.matmul %61, %62, %cst_45 {dimension_numbers = #tpu.dot_dimension_numbers<[1], [0], [0], [1], [0, 0, 1, 1], [], []>} : vector<2x256xf32>, vector<256x33xf32>, vector<2x33xf32> -> vector<2x33xf32>
    %c0_46 = arith.constant 0 : index
    %c0_47 = arith.constant 0 : index
    %64 = vector.load %arg18[%c0_46, %c0_47] : memref<1x33xf32, #tpu.memory_space<vmem>>, vector<1x33xf32>
    %65 = vector.broadcast %64 : vector<1x33xf32> to vector<2x33xf32>
    %66 = arith.addf %63, %65 : vector<2x33xf32>
    %cst_48 = arith.constant 0.000000e+00 : f32
    %67 = vector.broadcast %cst_48 : f32 to vector<2x33xf32>
    %68 = arith.subf %67, %66 : vector<2x33xf32>
    %69 = math.exp %68 : vector<2x33xf32>
    %cst_49 = arith.constant 1.000000e+00 : f32
    %70 = vector.broadcast %cst_49 : f32 to vector<2x33xf32>
    %71 = arith.addf %70, %69 : vector<2x33xf32>
    %cst_50 = arith.constant 1.000000e+00 : f32
    %72 = vector.broadcast %cst_50 : f32 to vector<2x33xf32>
    %73 = arith.divf %72, %71 : vector<2x33xf32>
    %74 = vector.extract_strided_slice %73 {offsets = [0, 0], sizes = [2, 1], strides = [1, 1]} : vector<2x33xf32> to vector<2x1xf32>
    %c0_51 = arith.constant 0 : index
    %c0_52 = arith.constant 0 : index
    %75 = vector.load %arg19[%c0_51, %c0_52] : memref<2x1xf32, #tpu.memory_space<vmem>>, vector<2x1xf32>
    tpu.vector_store %arg19[%c0_51, %c0_52], %74 {strides = array<i32>} : memref<2x1xf32, #tpu.memory_space<vmem>>, vector<2x1xf32>,
    %76 = vector.extract_strided_slice %73 {offsets = [0, 1], sizes = [2, 32], strides = [1, 1]} : vector<2x33xf32> to vector<2x32xf32>
    %c0_53 = arith.constant 0 : index
    %c0_54 = arith.constant 0 : index
    %77 = vector.load %arg20[%c0_53, %c0_54] : memref<2x32xf32, #tpu.memory_space<vmem>>, vector<2x32xf32>
    tpu.vector_store %arg20[%c0_53, %c0_54], %76 {strides = array<i32>} : memref<2x32xf32, #tpu.memory_space<vmem>>, vector<2x32xf32>,
    return
  }
}

</mosaic_0001>

<bundles_post_ra>
// kernel: watermark_forward.2
= control target key start
LH: loop header
LB: loop body
LE: loop exit
PB: predicated region body
PF: predicated region fallthrough
CT: control target
= control target key end

     0   :  { %s2269_s29 = smov 0   ;;  %s2554_s0 = inlined_call_operand.vmem [shape: bf16[2,101,40], index: 0, kind: input, shape index: {}]   ;;  %s2555_s1 = inlined_call_operand.vmem [shape: bf16[2,101,80], index: 1, kind: input, shape index: {}]   ;;  %s2556_s2 = inlined_call_operand.vmem [shape: bf16[2,101,160], index: 2, kind: input, shape index: {}]   ;;  %s2557_s3 = inlined_call_operand.vmem [shape: bf16[40,32], index: 3, kind: input, shape index: {}]   ;;  %s2558_s4 = inlined_call_operand.vmem [shape: bf16[80,32], index: 4, kind: input, shape index: {}]   ;;  %s2559_s5 = inlined_call_operand.vmem [shape: bf16[160,32], index: 5, kind: input, shape index: {}]   ;;  %s2560_s6 = inlined_call_operand.vmem [shape: f32[1,32], index: 6, kind: input, shape index: {}]   ;;  %s2561_s7 = inlined_call_operand.vmem [shape: f32[1,32], index: 7, kind: input, shape index: {}]   ;;  %s2562_s8 = inlined_call_operand.vmem [shape: f32[1,32], index: 8, kind: input, shape index: {}]   ;;  %s2563_s9 = inlined_call_operand.vmem [shape: f32[16,101], index: 9, kind: input, shape index: {}]   ;;  %s2564_s10 = inlined_call_operand.vmem [shape: f32[16,101], index: 10, kind: input, shape index: {}]   ;;  %s2565_s11 = inlined_call_operand.vmem [shape: f32[16,101], index: 11, kind: input, shape index: {}]   ;;  %s2566_s12 = inlined_call_operand.vmem [shape: f32[2,16,32], index: 12, kind: output, shape index: {0}]   ;;  %s2567_s13 = inlined_call_operand.vmem [shape: f32[2,16,32], index: 13, kind: output, shape index: {1}]   ;;  %s2568_s14 = inlined_call_operand.vmem [shape: f32[2,16,32], index: 14, kind: output, shape index: {2}]  }
   0x1 LB: > { %s1722_s30 = sadd.s32 4294967295, %s2189_s29   ;;  %p1726_p0 = scmp.ge.s32.totalorder %s2189_s29, 1  ;;  %s2189_s29 = sphi %s2269_s29, %s25_s29  }
   0x2   : > { %p437_p1 = scmp.lt.s32.totalorder %s2189_s29, 3 }
   0x4   : > { %p438_p2 = pnand %p1726_p0, %p437_p1 }
   0x5   : > { %v2131_v0 = vld [vmem:[%s2557_s3] sm:$0xff] (!%p438_p2)   ;;  %v2191_v1 = vmov (!%p438_p2), 0.0   ;;  %vm629_vm0 = vcmask (!%p438_p2), 1043456   ;;  %v2133_v3 = vld [vmem:[%s2557_s3 + $0x8] sm:$0xff] (!%p438_p2)   ;;  %p503_p3 = scmp.lt.s32.totalorder (!%p438_p2), %s1722_s30, 1  ;;  %vm2192_vm1 = vmmov (!%p438_p2), 0  }
   0x6   : > { %441 = sbr.rel (%p438_p2) target bundleno = 563 (0x233), region = 68  ;;  %1887 = vmatprep.subr.bf16.mxu0 (!%p438_p2), %v2191_v1  ;;  %1950 = vmatprep.subr.bf16.mxu1 (!%p438_p2), %v2191_v1  ;;  %v2132_v2 = vld [vmem:[%s2558_s4] sm:$0xff] (!%p438_p2)   ;;  %v2134_v4 = vld [vmem:[%s2558_s4 + $0x8] sm:$0xff] (!%p438_p2)   ;;  %v2135_v5 = vld [vmem:[%s2557_s3 + $0x10] ss:$0 sps:$4 sm:$0xff] (!%p438_p2)   ;;  %vm607_vm2 = vcmask (!%p438_p2), 326656  }
   0x7   : > { %1888 = vmatpush3.bf16.msra.mxu0 (!%p438_p2), %v2131_v0  ;;  %1951 = vmatpush3.bf16.msra.mxu1 (!%p438_p2), %v2132_v2  ;;  %v2136_v6 = vld [vmem:[%s2558_s4 + $0x10] sm:$0xff] (!%p438_p2)   ;;  %v631_v7 = vsel (!%p438_p2), %vm629_vm0, %v2135_v5, 0  ;;  %v2138_v9 = vld [vmem:[%s2558_s4 + $0x18] sm:$0xff] (!%p438_p2)   ;;  %v2139_v10 = vld [vmem:[%s2558_s4 + $0x20] sm:$0xff] (!%p438_p2)   ;;  %vm944_vm3 = vcmask (!%p438_p2), 654336   ;;  %v2193_v14 = vmov (!%p438_p2), 0  }
   0x8   : > { %1889 = vmatprep.subr.bf16.mxu0 (!%p438_p2), %v2191_v1  ;;  %1952 = vmatprep.subr.bf16.mxu1 (!%p438_p2), %v2191_v1  ;;  %v2142_v13 = vld [vmem:[%s2559_s5] sm:$0xff] (!%p438_p2)   ;;  %v2143_v15 = vld [vmem:[%s2559_s5 + $0x8] sm:$0xff] (!%p438_p2)   ;;  %v2146_v18 = vld [vmem:[%s2559_s5 + $0x10] sm:$0xff] (!%p438_p2)   ;;  %vm848_vm4 = vcmask (!%p438_p2), 261120   ;;  %vm762_vm5 = vcmask (!%p438_p2), 826368  }
   0x9   : > { %1893 = vmatprep.mubr.msk.bf16.mxu0 (!%p438_p2), %vm2192_vm1, %v2191_v1  ;;  %1960 = vmatprep.mubr.msk.bf16.mxu1 (!%p438_p2), %vm2192_vm1, %v2191_v1  ;;  %v2149_v19 = vld [vmem:[%s2559_s5 + $0x18] sm:$0xff] (!%p438_p2)   ;;  %v2152_v22 = vld [vmem:[%s2559_s5 + $0x20] sm:$0xff] (!%p438_p2)   ;;  %v2153_v23 = vld [vmem:[%s2559_s5 + $0x28] sm:$0xff] (!%p438_p2)  }
   0xa   : > { %v2156_v26 = vld [vmem:[%s2559_s5 + $0x30] sm:$0xff] (!%p438_p2)   ;;  %v2159_v27 = vld [vmem:[%s2559_s5 + $0x38] sm:$0xff] (!%p438_p2)   ;;  %v2160_v30 = vld [vmem:[%s2559_s5 + $0x40] sm:$0xff] (!%p438_p2)  }
   0xb   : > { %1890 = vmatpush3.bf16.msra.mxu0 (!%p438_p2), %v2133_v3  ;;  %1953 = vmatpush3.bf16.msra.mxu1 (!%p438_p2), %v2134_v4  ;;  %v2162_v31 = vld [vmem:[%s2559_s5 + $0x48] sm:$0xff] (!%p438_p2)   ;;  %v760_v50 = vld [vmem:[%s2563_s9] sm:$0xff] (!%p438_p2) }
   0xc   : > { %1891 = vmatprep.subr.bf16.mxu0 (!%p438_p2), %v2191_v1  ;;  %1954 = vmatprep.subr.bf16.mxu1 (!%p438_p2), %v2191_v1  ;;  %v2442_v51 = vld [vmem:[%s2560_s6] ss:$0 sm:$0xff] (!%p438_p2) }
   0xd   : > { %s2570_s30 = smov (!%p503_p3, %s1722_s30), 1  ;;  %v2449_v61 = vld [vmem:[%s2561_s7] ss:$0 sm:$0xff] }
   0xe   : > { %s2118_s27 = smul.u32 52, %s2570_s30 }
   0xf   : > { %1892 = vmatpush3.bf16.msra.mxu0 %v631_v7  ;;  %1955 = vmatpush3.bf16.msra.mxu1 %v2136_v6  ;;  %s2119_s17 = smul.u32 104, %s2570_s30 }
  0x10   : > { %s2312_s16 = scalar_lea.vmem %s2554_s0, %s2118_s27  ;;  %s2321_s21 = scalar_lea.vmem %s2555_s1, %s2118_s27  ;;  %1956 = vmatprep.subr.bf16.mxu1 %v2191_v1 }
  0x11   : > { %v2137_v8 = vld [vmem:[%s2312_s16] sm:$0xff]   ;;  %v2140_v11 = vld [vmem:[%s2312_s16 + $0x8] sm:$0xff]   ;;  %v2144_v16 = vld [vmem:[%s2312_s16 + $0x10] sm:$0xff]   ;;  %s2361_s23 = scalar_lea.vmem %s2556_s2, %s2119_s17 }
  0x12   : > { %1894 = vmatmul.mubr.msk.bf16.vlgmr.msra.gmra.mrb[0].mxu0 %vm607_vm2, %v2137_v8  ;;  %v2141_v12 = vld [vmem:[%s2321_s21] sm:$0xff]   ;;  %v2145_v17 = vld [vmem:[%s2321_s21 + $0x8] sm:$0xff]   ;;  %v2147_v20 = vld [vmem:[%s2312_s16 + $0x18] sm:$0xff]  }
  0x13   : > { %1897 = vmatprep.mubr.msk.bf16.mxu0 %vm2192_vm1, %v2191_v1  ;;  %1957 = vmatpush3.bf16.msra.mxu1 %v2138_v9  ;;  %v2148_v21 = vld [vmem:[%s2321_s21 + $0x10] sm:$0xff]   ;;  %v2150_v24 = vld [vmem:[%s2312_s16 + $0x20] sm:$0xff]   ;;  %v2151_v25 = vld [vmem:[%s2321_s21 + $0x18] sm:$0xff]  }
  0x14   : > { %1958 = vmatprep.subr.bf16.mxu1 %v2191_v1  ;;  %v2154_v28 = vld [vmem:[%s2312_s16 + $0x28] sm:$0xff]   ;;  %v2155_v29 = vld [vmem:[%s2321_s21 + $0x20] sm:$0xff]   ;;  %v2157_v32 = vld [vmem:[%s2312_s16 + $0x30] ss:$0 sps:$4 sm:$0x77]  }
  0x15   : > { %v2158_v33 = vld [vmem:[%s2321_s21 + $0x28] sm:$0xff]   ;;  %v2161_v34 = vld [vmem:[%s2321_s21 + $0x30] ss:$0 sps:$4 sm:$0x77]   ;;  %v2166_v37 = vld [vmem:[%s2361_s23 + $0x14] ss:$8 sps:$4 sm:$0xff]  }
  0x16   : > { %v2165_v35 = vld [vmem:[%s2361_s23 + $0x4] ss:$8 sps:$4 sm:$0xff]   ;;  %v2163_v36 = vld [vmem:[%s2361_s23] ss:$8 sps:$4 sm:$0xff]   ;;  %v2168_v38 = vld [vmem:[%s2361_s23 + $0x10] ss:$8 sps:$4 sm:$0xff]  }
  0x17   : > { %1959 = vmatpush3.bf16.msra.mxu1 %v2139_v10  ;;  %v2169_v39 = vld [vmem:[%s2361_s23 + $0x24] ss:$8 sps:$4 sm:$0xff]   ;;  %v2171_v40 = vld [vmem:[%s2361_s23 + $0x20] ss:$8 sps:$4 sm:$0xff]   ;;  %v2172_v41 = vld [vmem:[%s2361_s23 + $0x34] ss:$8 sps:$4 sm:$0xff]  }
  0x18   : > { %1362 = vmatprep.subr.bf16.mxu1 %v2193_v14  ;;  %v2174_v42 = vld [vmem:[%s2361_s23 + $0x30] ss:$8 sps:$4 sm:$0xff]   ;;  %v2175_v43 = vld [vmem:[%s2361_s23 + $0x44] ss:$8 sps:$4 sm:$0xff]   ;;  %v2177_v44 = vld [vmem:[%s2361_s23 + $0x40] ss:$8 sps:$4 sm:$0xff]  }
  0x19   : > { %v2178_v45 = vld [vmem:[%s2361_s23 + $0x54] ss:$8 sps:$4 sm:$0xff]   ;;  %v1193_v46 = vld [vmem:[%s2361_s23 + $0x60] sm:$0x77]  ;;  %v2180_v47 = vld [vmem:[%s2361_s23 + $0x50] ss:$8 sps:$4 sm:$0xff]  }
  0x1a   : > { %1898 = vmatmul.mubr.msk.bf16.gmra.mrb[4].mxu0 %vm607_vm2, %v2140_v11  ;;  %1961 = vmatmul.mubr.msk.bf16.vlgmr.msra.gmra.mrb[0].mxu1 %vm944_vm3, %v2141_v12  ;;  %v1794_v48 = vcombine.high %v1193_v46, %v1193_v46  ;;  %v1793_v49 = vcombine.low %v1193_v46, %v1193_v46  ;;  %s1817_s23 = sshll.u32 %s2570_s30, 4 }
  0x1b   : > { %1901 = vmatprep.mubr.msk.bf16.mxu0 %vm2192_vm1, %v2191_v1  ;;  %1363 = vmatpush1.bf16.msra.mxu1 %v2142_v13  ;;  %s522_s15 = scalar_lea.vmem %s2566_s12, %s1817_s23  ;;  %s527_s19 = scalar_lea.vmem %s2567_s13, %s1817_s23 }
  0x1c   : > { %1964 = vmatprep.mubr.msk.bf16.mxu1 %vm2192_vm1, %v2191_v1  ;;  %1364 = vmatprep.subr.bf16.mxu1 %v2193_v14  ;;  %s532_s22 = scalar_lea.vmem %s2568_s14, %s1817_s23 }
  0x1f   : > { %1365 = vmatpush1.bf16.msra.mxu1 %v2143_v15 }
  0x20   : > { %1366 = vmatprep.subr.bf16.mxu1 %v2193_v14 }
  0x22   : > { %1902 = vmatmul.mubr.msk.bf16.gmra.mrb[8].mxu0 %vm607_vm2, %v2144_v16  ;;  %1965 = vmatmul.mubr.msk.bf16.gmra.mrb[4].mxu1 %vm944_vm3, %v2145_v17 }
  0x23   : > { %1905 = vmatprep.mubr.msk.bf16.mxu0 %vm2192_vm1, %v2191_v1  ;;  %1367 = vmatpush1.bf16.msra.mxu1 %v2146_v18 }
  0x24   : > { %1968 = vmatprep.mubr.msk.bf16.mxu1 %vm2192_vm1, %v2191_v1  ;;  %1368 = vmatprep.subr.bf16.mxu1 %v2193_v14 }
  0x27   : > { %1369 = vmatpush1.bf16.msra.mxu1 %v2149_v19 }
  0x28   : > { %1370 = vmatprep.subr.bf16.mxu1 %v2193_v14 }
  0x2a   : > { %1906 = vmatmul.mubr.msk.bf16.gmra.mrb[12].mxu0 %vm607_vm2, %v2147_v20  ;;  %1969 = vmatmul.mubr.msk.bf16.gmra.mrb[8].mxu1 %vm944_vm3, %v2148_v21 }
  0x2b   : > { %1909 = vmatprep.mubr.msk.bf16.mxu0 %vm2192_vm1, %v2191_v1  ;;  %1972 = vmatprep.mubr.msk.bf16.mxu1 %vm2192_vm1, %v2191_v1 }
  0x2c   : > { %1371 = vmatpush1.bf16.msra.mxu1 %v2152_v22 }
  0x2d   : > { %1372 = vmatprep.subr.bf16.mxu1 %v2193_v14 }
  0x30   : > { %1373 = vmatpush1.bf16.msra.mxu1 %v2153_v23 }
  0x31   : > { %1374 = vmatprep.subr.bf16.mxu1 %v2193_v14 }
  0x32   : > { %1910 = vmatmul.mubr.msk.bf16.gmra.mrb[16].mxu0 %vm607_vm2, %v2150_v24  ;;  %1973 = vmatmul.mubr.msk.bf16.gmra.mrb[12].mxu1 %vm944_vm3, %v2151_v25 }
  0x33   : > { %1913 = vmatprep.mubr.msk.bf16.mxu0 %vm2192_vm1, %v2191_v1  ;;  %1976 = vmatprep.mubr.msk.bf16.mxu1 %vm2192_vm1, %v2191_v1 }
  0x34   : > { %1375 = vmatpush1.bf16.msra.mxu1 %v2156_v26 }
  0x35   : > { %1376 = vmatprep.subr.bf16.mxu1 %v2193_v14 }
  0x38   : > { %1377 = vmatpush1.bf16.msra.mxu1 %v2159_v27 }
  0x39   : > { %1378 = vmatprep.subr.bf16.mxu1 %v2193_v14 }
  0x3a   : > { %1914 = vmatmul.mubr.msk.bf16.gmra.mrb[20].mxu0 %vm607_vm2, %v2154_v28  ;;  %1977 = vmatmul.mubr.msk.bf16.gmra.mrb[16].mxu1 %vm944_vm3, %v2155_v29 }
  0x3b   : > { %1917 = vmatprep.mubr.msk.bf16.mxu0 %vm2192_vm1, %v2191_v1  ;;  %1980 = vmatprep.mubr.msk.bf16.mxu1 %vm2192_vm1, %v2191_v1 }
  0x3c   : > { %1379 = vmatpush1.bf16.msra.mxu1 %v2160_v30 }
  0x3d   : > { %1380 = vmatprep.subr.bf16.mxu1 %v2193_v14 }
  0x40   : > { %1381 = vmatpush1.bf16.msra.mxu1 %v2162_v31 }
  0x42   : > { %1918 = vmatmul.mubr.msk.bf16.gmra.mrb[24].mxu0 %vm607_vm2, %v2157_v32  ;;  %1981 = vmatmul.mubr.msk.bf16.gmra.mrb[20].mxu1 %vm944_vm3, %v2158_v33 }
  0x43   : > { %1984 = vmatprep.mubr.msk.bf16.mxu1 %vm2192_vm1, %v2191_v1  ;;  %1947 = vmatprep.mubr.msk.f32.mxu0 %vm762_vm5, %v760_v50 }
  0x4a   : > { %1985 = vmatmul.mubr.msk.bf16.gmra.mrb[24].mxu1 %vm944_vm3, %v2161_v34 }
  0x4b   : > { %1805 = vmatprep.mubr.msk.bf16.mxu1 %vm848_vm4, %v2165_v35 }
  0x52   : > { %1395 = vmatmul.mubr.bf16.vlgmr.msra.gmra.mrb[28].mxu1 %v2163_v36 }
  0x53   : > { %1806 = vmatprep.mubr.msk.bf16.mxu1 %vm848_vm4, %v2166_v37 }
  0x5a   : > { %1403 = vmatmul.mubr.bf16.gmra.mrb[32].mxu1 %v2168_v38 }
  0x5b   : > { %1807 = vmatprep.mubr.msk.bf16.mxu1 %vm848_vm4, %v2169_v39 }
  0x62   : > { %1411 = vmatmul.mubr.bf16.gmra.mrb[36].mxu1 %v2171_v40 }
  0x63   : > { %1808 = vmatprep.mubr.msk.bf16.mxu1 %vm848_vm4, %v2172_v41 }
  0x6a   : > { %1419 = vmatmul.mubr.bf16.gmra.mrb[40].mxu1 %v2174_v42 }
  0x6b   : > { %1809 = vmatprep.mubr.msk.bf16.mxu1 %vm848_vm4, %v2175_v43 }
  0x72   : > { %1427 = vmatmul.mubr.bf16.gmra.mrb[44].mxu1 %v2177_v44 }
  0x73   : > { %1810 = vmatprep.mubr.msk.bf16.mxu1 %vm848_vm4, %v2178_v45 }
  0x7a   : > { %1435 = vmatmul.mubr.bf16.gmra.mrb[48].mxu1 %v2180_v47 }
  0x7b   : > { %1811 = vmatprep.mubr.msk.bf16.mxu1 %vm848_vm4, %v1794_v48 }
  0x82   : > { %1443 = vmatmul.mubr.bf16.gmra.mrb[52].mxu1 %v1793_v49 }
  0xe5   : > { %v667_v52 = vpop.f32.mrb[0].mxu0 }
  0xe6   : > { %v668_v53 = vadd.f32 %v2442_v51, %v667_v52  ;;  %v1895_v54 = vpop.f32.mrb[1].mxu0 }
  0xe7   : > { %v670_v55 = vpop.f32.mrb[2].mxu0 }
  0xe8   : > { %vm721_vm6 = vcmp.ge.f32.partialorder %v668_v53, 0.0  ;;  %v734_v56 = vmul.f32 0.2, %v668_v53  ;;  %v671_v57 = vadd.f32 %v2442_v51, %v670_v55  ;;  %v1896_v58 = vpop.f32.mrb[3].mxu0 }
  0xea   : > { %vm722_vm7 = vcmp.ge.f32.partialorder %v671_v57, 0.0  ;;  %v735_v59 = vmul.f32 0.2, %v671_v57  ;;  %v747_v60 = vsel %vm721_vm6, %v668_v53, %v734_v56 }
  0xec   : > { %v748_v62 = vsel %vm722_vm7, %v671_v57, %v735_v59 }
  0xed   : > { %v675_v63 = vpop.f32.mrb[4].mxu0  ;;  %v2046_v0 = vpack.c.bf16 %v748_v62, %v747_v60  ;;  %v1000_v2 = vpop.f32.mrb[0].mxu1 }
  0xee   : > { %v676_v1 = vadd.f32 %v2442_v51, %v675_v63  ;;  %v1899_v3 = vpop.f32.mrb[5].mxu0  ;;  %v1001_v4 = vadd.f32 %v2449_v61, %v1000_v2  ;;  %v1962_v5 = vpop.f32.mrb[1].mxu1 }
  0xef   : > { %v678_v6 = vpop.f32.mrb[6].mxu0  ;;  %2047 = vmatprep.subr.bf16.mxu0 %v2046_v0  ;;  %v1003_v9 = vpop.f32.mrb[2].mxu1 }
  0xf0   : > { %vm723_vm8 = vcmp.ge.f32.partialorder %v676_v1, 0.0  ;;  %v736_v7 = vmul.f32 0.2, %v676_v1  ;;  %v679_v8 = vadd.f32 %v2442_v51, %v678_v6  ;;  %v1900_v10 = vpop.f32.mrb[7].mxu0  ;;  %2049 = vmatpush3.bf16.msra.mxu0 %v2046_v0  ;;  %v1067_v11 = vmul.f32 0.2, %v1001_v4 }
  0xf1   : > { %v1004_v12 = vadd.f32 %v2449_v61, %v1003_v9  ;;  %v1963_v13 = vpop.f32.mrb[3].mxu1  ;;  %vm1054_vm9 = vcmp.ge.f32.partialorder %v1001_v4, 0.0 }
  0xf2   : > { %vm724_vm10 = vcmp.ge.f32.partialorder %v679_v8, 0.0  ;;  %v737_v14 = vmul.f32 0.2, %v679_v8  ;;  %v749_v15 = vsel %vm723_vm8, %v676_v1, %v736_v7  ;;  %v1080_v20 = vsel %vm1054_vm9, %v1001_v4, %v1067_v11 }
  0xf3   : > { %vm1055_vm11 = vcmp.ge.f32.partialorder %v1004_v12, 0.0  ;;  %v1068_v16 = vmul.f32 0.2, %v1004_v12 }
  0xf4   : > { %v750_v17 = vsel %vm724_vm10, %v679_v8, %v737_v14 }
  0xf5   : > { %v683_v18 = vpop.f32.mrb[8].mxu0  ;;  %v2050_v19 = vpack.c.bf16 %v750_v17, %v749_v15  ;;  %v1081_v21 = vsel %vm1055_vm11, %v1004_v12, %v1068_v16  ;;  %v1008_v23 = vpop.f32.mrb[4].mxu1 }
  0xf6   : > { %v684_v22 = vadd.f32 %v2442_v51, %v683_v18  ;;  %v1903_v24 = vpop.f32.mrb[9].mxu0  ;;  %v2456_v25 = vpack.c.bf16 %v1081_v21, %v1080_v20  ;;  %v1009_v26 = vadd.f32 %v2449_v61, %v1008_v23  ;;  %v1966_v27 = vpop.f32.mrb[5].mxu1 }
  0xf7   : > { %v686_v28 = vpop.f32.mrb[10].mxu0  ;;  %2051 = vmatprep.subr.bf16.mxu0 %v2050_v19  ;;  %v1011_v31 = vpop.f32.mrb[6].mxu1 }
  0xf8   : > { %vm725_vm12 = vcmp.ge.f32.partialorder %v684_v22, 0.0  ;;  %v738_v29 = vmul.f32 0.2, %v684_v22  ;;  %v687_v30 = vadd.f32 %v2442_v51, %v686_v28  ;;  %v1904_v32 = vpop.f32.mrb[11].mxu0  ;;  %2053 = vmatpush3.bf16.msra.mxu0 %v2050_v19  ;;  %v1069_v33 = vmul.f32 0.2, %v1009_v26 }
  0xf9   : > { %v1012_v34 = vadd.f32 %v2449_v61, %v1011_v31  ;;  %v1967_v35 = vpop.f32.mrb[7].mxu1  ;;  %vm1056_vm13 = vcmp.ge.f32.partialorder %v1009_v26, 0.0 }
  0xfa   : > { %vm726_vm14 = vcmp.ge.f32.partialorder %v687_v30, 0.0  ;;  %v739_v36 = vmul.f32 0.2, %v687_v30  ;;  %v751_v37 = vsel %vm725_vm12, %v684_v22, %v738_v29  ;;  %v1082_v42 = vsel %vm1056_vm13, %v1009_v26, %v1069_v33 }
  0xfb   : > { %vm1057_vm15 = vcmp.ge.f32.partialorder %v1012_v34, 0.0  ;;  %v1070_v38 = vmul.f32 0.2, %v1012_v34 }
  0xfc   : > { %v752_v39 = vsel %vm726_vm14, %v687_v30, %v739_v36 }
  0xfd   : > { %v691_v40 = vpop.f32.mrb[12].mxu0  ;;  %v2054_v41 = vpack.c.bf16 %v752_v39, %v751_v37  ;;  %v1083_v43 = vsel %vm1057_vm15, %v1012_v34, %v1070_v38  ;;  %v1016_v45 = vpop.f32.mrb[8].mxu1  ;;  %vm769_vm15 = vcmask 1044480  }
  0xfe   : > { %v692_v44 = vadd.f32 %v2442_v51, %v691_v40  ;;  %v1907_v46 = vpop.f32.mrb[13].mxu0  ;;  %v2462_v47 = vpack.c.bf16 %v1083_v43, %v1082_v42  ;;  %v1017_v48 = vadd.f32 %v2449_v61, %v1016_v45  ;;  %v1970_v49 = vpop.f32.mrb[9].mxu1 }
  0xff   : > { %v694_v50 = vpop.f32.mrb[14].mxu0  ;;  %2055 = vmatprep.subr.bf16.mxu0 %v2054_v41  ;;  %v1019_v54 = vpop.f32.mrb[10].mxu1 }
 0x100   : > { %vm727_vm0 = vcmp.ge.f32.partialorder %v692_v44, 0.0  ;;  %v740_v52 = vmul.f32 0.2, %v692_v44  ;;  %v695_v53 = vadd.f32 %v2442_v51, %v694_v50  ;;  %v1908_v55 = vpop.f32.mrb[15].mxu0  ;;  %2057 = vmatpush3.bf16.msra.mxu0 %v2054_v41  ;;  %v1071_v56 = vmul.f32 0.2, %v1017_v48 }
 0x101   : > { %v1020_v57 = vadd.f32 %v2449_v61, %v1019_v54  ;;  %v1971_v58 = vpop.f32.mrb[11].mxu1  ;;  %vm1058_vm1 = vcmp.ge.f32.partialorder %v1017_v48, 0.0 }
 0x102   : > { %vm728_vm2 = vcmp.ge.f32.partialorder %v695_v53, 0.0  ;;  %v741_v59 = vmul.f32 0.2, %v695_v53  ;;  %v753_v60 = vsel %vm727_vm0, %v692_v44, %v740_v52  ;;  %v1084_v2 = vsel %vm1058_vm1, %v1017_v48, %v1071_v56 }
 0x103   : > { %vm1059_vm3 = vcmp.ge.f32.partialorder %v1020_v57, 0.0  ;;  %v1072_v62 = vmul.f32 0.2, %v1020_v57 }
 0x104   : > { %v754_v63 = vsel %vm728_vm2, %v695_v53, %v741_v59 }
 0x105   : > { %v699_v0 = vpop.f32.mrb[16].mxu0  ;;  %v2058_v1 = vpack.c.bf16 %v754_v63, %v753_v60  ;;  %v1085_v3 = vsel %vm1059_vm3, %v1020_v57, %v1072_v62  ;;  %v1024_v5 = vpop.f32.mrb[12].mxu1 }
 0x106   : > { %v700_v4 = vadd.f32 %v2442_v51, %v699_v0  ;;  %v1911_v6 = vpop.f32.mrb[17].mxu0  ;;  %v2468_v7 = vpack.c.bf16 %v1085_v3, %v1084_v2  ;;  %v1025_v8 = vadd.f32 %v2449_v61, %v1024_v5  ;;  %v1974_v9 = vpop.f32.mrb[13].mxu1  ;;  %v1093_v3 = vld [vmem:[%s2564_s10] sm:$0xff] }
 0x107   : > { %v702_v10 = vpop.f32.mrb[18].mxu0  ;;  %2059 = vmatprep.subr.bf16.mxu0 %v2058_v1  ;;  %v1027_v13 = vpop.f32.mrb[14].mxu1 }
 0x108   : > { %vm729_vm6 = vcmp.ge.f32.partialorder %v700_v4, 0.0  ;;  %v742_v11 = vmul.f32 0.2, %v700_v4  ;;  %v703_v12 = vadd.f32 %v2442_v51, %v702_v10  ;;  %v1912_v14 = vpop.f32.mrb[19].mxu0  ;;  %2061 = vmatpush3.bf16.msra.mxu0 %v2058_v1  ;;  %v1073_v15 = vmul.f32 0.2, %v1025_v8 }
 0x109   : > { %v1028_v16 = vadd.f32 %v2449_v61, %v1027_v13  ;;  %v1975_v17 = vpop.f32.mrb[15].mxu1  ;;  %vm1060_vm7 = vcmp.ge.f32.partialorder %v1025_v8, 0.0  ;;  %v761_v1 = vld [vmem:[%s2563_s9 + $0x8] sm:$0xff] }
 0x10a   : > { %vm730_vm8 = vcmp.ge.f32.partialorder %v703_v12, 0.0  ;;  %v743_v18 = vmul.f32 0.2, %v703_v12  ;;  %v755_v19 = vsel %vm729_vm6, %v700_v4, %v742_v11  ;;  %v1086_v24 = vsel %vm1060_vm7, %v1025_v8, %v1073_v15 }
 0x10b   : > { %vm1061_vm9 = vcmp.ge.f32.partialorder %v1028_v16, 0.0  ;;  %v1074_v20 = vmul.f32 0.2, %v1028_v16 }
 0x10c   : > { %v756_v21 = vsel %vm730_vm8, %v703_v12, %v743_v18  ;;  %v2500_v12 = vld [vmem:[%s2562_s8] ss:$0 sm:$0xff] }
 0x10d   : > { %v707_v22 = vpop.f32.mrb[20].mxu0  ;;  %v2062_v23 = vpack.c.bf16 %v756_v21, %v755_v19  ;;  %v1087_v26 = vsel %vm1061_vm9, %v1028_v16, %v1074_v20  ;;  %v1032_v28 = vpop.f32.mrb[16].mxu1 }
 0x10e   : > { %v708_v27 = vadd.f32 %v2442_v51, %v707_v22  ;;  %v1915_v29 = vpop.f32.mrb[21].mxu0  ;;  %v2474_v30 = vpack.c.bf16 %v1087_v26, %v1086_v24  ;;  %v1033_v31 = vadd.f32 %v2449_v61, %v1032_v28  ;;  %v1978_v32 = vpop.f32.mrb[17].mxu1 }
 0x10f   : > { %v710_v33 = vpop.f32.mrb[22].mxu0  ;;  %2063 = vmatprep.subr.bf16.mxu0 %v2062_v23  ;;  %v1035_v36 = vpop.f32.mrb[18].mxu1  ;;  %v1094_v32 = vld [vmem:[%s2564_s10 + $0x8] sm:$0xff] }
 0x110   : > { %vm731_vm10 = vcmp.ge.f32.partialorder %v708_v27, 0.0  ;;  %v744_v34 = vmul.f32 0.2, %v708_v27  ;;  %v711_v35 = vadd.f32 %v2442_v51, %v710_v33  ;;  %v1916_v37 = vpop.f32.mrb[23].mxu0  ;;  %2065 = vmatpush3.bf16.msra.mxu0 %v2062_v23  ;;  %v1075_v38 = vmul.f32 0.2, %v1033_v31 }
 0x111   : > { %v1036_v39 = vadd.f32 %v2449_v61, %v1035_v36  ;;  %v1979_v40 = vpop.f32.mrb[19].mxu1  ;;  %vm1062_vm11 = vcmp.ge.f32.partialorder %v1033_v31, 0.0 }
 0x112   : > { %vm732_vm12 = vcmp.ge.f32.partialorder %v711_v35, 0.0  ;;  %v745_v41 = vmul.f32 0.2, %v711_v35  ;;  %v757_v42 = vsel %vm731_vm10, %v708_v27, %v744_v34  ;;  %v1088_v48 = vsel %vm1062_vm11, %v1033_v31, %v1075_v38 }
 0x113   : > { %vm1063_vm13 = vcmp.ge.f32.partialorder %v1036_v39, 0.0  ;;  %v1076_v43 = vmul.f32 0.2, %v1036_v39 }
 0x114   : > { %v758_v44 = vsel %vm732_vm12, %v711_v35, %v745_v41  ;;  %v1489_v35 = vld [vmem:[%s2565_s11] sm:$0xff] }
 0x115   : > { %v715_v45 = vpop.f32.mrb[24].mxu0  ;;  %v2066_v46 = vpack.c.bf16 %v758_v44, %v757_v42  ;;  %v1089_v49 = vsel %vm1063_vm13, %v1036_v39, %v1076_v43  ;;  %v1040_v52 = vpop.f32.mrb[20].mxu1 }
 0x116   : > { %v716_v50 = vadd.f32 %v2442_v51, %v715_v45  ;;  %v1919_v53 = vpop.f32.mrb[25].mxu0  ;;  %v2086_v54 = vpack.c.bf16 %v1089_v49, %v1088_v48  ;;  %v1041_v55 = vadd.f32 %v2449_v61, %v1040_v52  ;;  %v1982_v56 = vpop.f32.mrb[21].mxu1 }
 0x117   : > { %2067 = vmatprep.subr.bf16.mxu0 %v2066_v46  ;;  %v718_v57 = vpop.f32.mrb[26].mxu0  ;;  %v1043_v59 = vpop.f32.mrb[22].mxu1 }
 0x118   : > { %vm733_vm14 = vcmp.ge.f32.partialorder %v716_v50, 0.0  ;;  %v746_v58 = vmul.f32 0.2, %v716_v50  ;;  %2069 = vmatpush3.bf16.msra.mxu0 %v2066_v46  ;;  %v1920_v60 = vpop.f32.mrb[27].mxu0  ;;  %v1077_v62 = vmul.f32 0.2, %v1041_v55  ;;  %v1044_v63 = vadd.f32 %v2449_v61, %v1043_v59 }
 0x119   : > { %v1983_v0 = vpop.f32.mrb[23].mxu1  ;;  %vm1064_vm0 = vcmp.ge.f32.partialorder %v1041_v55, 0.0 }
 0x11a   : > { %v759_v51 = vsel %vm733_vm14, %v716_v50, %v746_v58  ;;  %vm1065_vm1 = vcmp.ge.f32.partialorder %v1044_v63, 0.0  ;;  %v1078_v2 = vmul.f32 0.2, %v1044_v63  ;;  %v1090_v4 = vsel %vm1064_vm0, %v1041_v55, %v1077_v62 }
 0x11b   : > { %1945 = vmatprep.subr.msk.mxu0 %vm769_vm15, %v759_v51 }
 0x11c   : > { %1946 = vmatpush3.msk.msra.mxu0 %vm769_vm15, %v759_v51  ;;  %v1091_v5 = vsel %vm1065_vm1, %v1044_v63, %v1078_v2 }
 0x11d   : > { %2071 = vmatprep.subr.bf16.mxu0 %v2456_v25  ;;  %1948 = vmatmul.mubr.msk.f32.vlgmr.msra.gmra.mrb[28].mxu0 %vm762_vm5, %v761_v1  ;;  %v1048_v6 = vpop.f32.mrb[24].mxu1  ;;  %v2090_v8 = vpack.c.bf16 %v1091_v5, %v1090_v4 }
 0x11e   : > { %2073 = vmatpush3.bf16.msra.mxu0 %v2456_v25  ;;  %2014 = vmatprep.mubr.msk.f32.mxu0 %vm762_vm5, %v1093_v3  ;;  %v1986_v9 = vpop.f32.mrb[25].mxu1  ;;  %v1049_v18 = vadd.f32 %v2449_v61, %v1048_v6 }
 0x11f   : > { %2075 = vmatprep.subr.bf16.mxu0 %v2462_v47  ;;  %v1051_v10 = vpop.f32.mrb[26].mxu1 }
 0x120   : > { %v1987_v11 = vpop.f32.mrb[27].mxu1  ;;  %v1079_v21 = vmul.f32 0.2, %v1049_v18  ;;  %vm1066_vm6 = vcmp.ge.f32.partialorder %v1049_v18, 0.0 }
 0x122   : > { %2077 = vmatpush3.bf16.msra.mxu0 %v2462_v47 }
 0x123   : > { %2079 = vmatprep.subr.bf16.mxu0 %v2468_v7 }
 0x125   : > { %v1396_v13 = vpop.f32.mrb[28].mxu1 }
 0x126   : > { %2081 = vmatpush3.bf16.msra.mxu0 %v2468_v7  ;;  %v1397_v25 = vadd.f32 %v2500_v12, %v1396_v13  ;;  %v1398_v14 = vpop.f32.mrb[29].mxu1 }
 0x127   : > { %2083 = vmatprep.subr.bf16.mxu0 %v2474_v30  ;;  %v1399_v15 = vpop.f32.mrb[30].mxu1 }
 0x128   : > { %v1463_v16 = vmul.f32 0.2, %v1397_v25  ;;  %v1400_v17 = vadd.f32 %v2500_v12, %v1399_v15  ;;  %v1401_v47 = vpop.f32.mrb[31].mxu1  ;;  %vm1450_vm2 = vcmp.ge.f32.partialorder %v1397_v25, 0.0 }
 0x12a   : > { %2085 = vmatpush3.bf16.msra.mxu0 %v2474_v30  ;;  %vm1451_vm3 = vcmp.ge.f32.partialorder %v1400_v17, 0.0  ;;  %v1464_v19 = vmul.f32 0.2, %v1400_v17  ;;  %v1476_v20 = vsel %vm1450_vm2, %v1397_v25, %v1463_v16  ;;  %v1092_v30 = vsel %vm1066_vm6, %v1049_v18, %v1079_v21 }
 0x12b   : > { %2087 = vmatprep.subr.bf16.mxu0 %v2086_v54 }
 0x12c   : > { %v1477_v7 = vsel %vm1451_vm3, %v1400_v17, %v1464_v19 }
 0x12d   : > { %v1404_v22 = vpop.f32.mrb[32].mxu1  ;;  %v2094_v23 = vpack.c.bf16 %v1477_v7, %v1476_v20 }
 0x12e   : > { %2089 = vmatpush3.bf16.msra.mxu0 %v2086_v54  ;;  %v1405_v24 = vadd.f32 %v2500_v12, %v1404_v22  ;;  %v1406_v26 = vpop.f32.mrb[33].mxu1 }
 0x12f   : > { %2091 = vmatprep.subr.bf16.mxu0 %v2090_v8  ;;  %v1407_v27 = vpop.f32.mrb[34].mxu1  ;;  %v1490_v26 = vld [vmem:[%s2565_s11 + $0x8] sm:$0xff] }
 0x130   : > { %v1465_v28 = vmul.f32 0.2, %v1405_v24  ;;  %v1408_v61 = vadd.f32 %v2500_v12, %v1407_v27  ;;  %v1409_v29 = vpop.f32.mrb[35].mxu1  ;;  %vm1452_vm7 = vcmp.ge.f32.partialorder %v1405_v24, 0.0 }
 0x132   : > { %2093 = vmatpush3.bf16.msra.mxu0 %v2090_v8  ;;  %vm1453_vm8 = vcmp.ge.f32.partialorder %v1408_v61, 0.0  ;;  %v1466_v31 = vmul.f32 0.2, %v1408_v61  ;;  %v1478_v33 = vsel %vm1452_vm7, %v1405_v24, %v1465_v28 }
 0x133   : > { %2012 = vmatprep.subr.msk.mxu0 %vm769_vm15, %v1092_v30 }
 0x134   : > { %v1479_v34 = vsel %vm1453_vm8, %v1408_v61, %v1466_v31 }
 0x135   : > { %v1412_v36 = vpop.f32.mrb[36].mxu1  ;;  %v2098_v37 = vpack.c.bf16 %v1479_v34, %v1478_v33 }
 0x136   : > { %2013 = vmatpush3.msk.msra.mxu0 %vm769_vm15, %v1092_v30  ;;  %v1413_v38 = vadd.f32 %v2500_v12, %v1412_v36  ;;  %v1414_v39 = vpop.f32.mrb[37].mxu1 }
 0x137   : > { %2095 = vmatprep.subr.bf16.mxu0 %v2094_v23  ;;  %2015 = vmatmul.mubr.msk.f32.vlgmr.msra.gmra.mrb[30].mxu0 %vm762_vm5, %v1094_v32  ;;  %v1415_v40 = vpop.f32.mrb[38].mxu1 }
 0x138   : > { %2097 = vmatpush3.bf16.msra.mxu0 %v2094_v23  ;;  %2043 = vmatprep.mubr.msk.f32.mxu0 %vm762_vm5, %v1489_v35  ;;  %v1467_v41 = vmul.f32 0.2, %v1413_v38  ;;  %v1416_v42 = vadd.f32 %v2500_v12, %v1415_v40  ;;  %v1417_v43 = vpop.f32.mrb[39].mxu1  ;;  %vm1454_vm9 = vcmp.ge.f32.partialorder %v1413_v38, 0.0 }
 0x139   : > { %2099 = vmatprep.subr.bf16.mxu0 %v2098_v37 }
 0x13a   : > { %vm1455_vm10 = vcmp.ge.f32.partialorder %v1416_v42, 0.0  ;;  %v1468_v44 = vmul.f32 0.2, %v1416_v42  ;;  %v1480_v45 = vsel %vm1454_vm9, %v1413_v38, %v1467_v41 }
 0x13c   : > { %2101 = vmatpush3.bf16.msra.mxu0 %v2098_v37  ;;  %v1481_v46 = vsel %vm1455_vm10, %v1416_v42, %v1468_v44 }
 0x13d   : > { %v1420_v48 = vpop.f32.mrb[40].mxu1  ;;  %v2102_v49 = vpack.c.bf16 %v1481_v46, %v1480_v45 }
 0x13e   : > { %v1421_v50 = vadd.f32 %v2500_v12, %v1420_v48  ;;  %v1422_v52 = vpop.f32.mrb[41].mxu1 }
 0x13f   : > { %v1423_v53 = vpop.f32.mrb[42].mxu1  ;;  %2103 = vmatprep.subr.bf16.mxu0 %v2102_v49 }
 0x140   : > { %v1469_v54 = vmul.f32 0.2, %v1421_v50  ;;  %v1424_v55 = vadd.f32 %v2500_v12, %v1423_v53  ;;  %v1425_v56 = vpop.f32.mrb[43].mxu1  ;;  %2105 = vmatpush3.bf16.msra.mxu0 %v2102_v49  ;;  %vm1456_vm11 = vcmp.ge.f32.partialorder %v1421_v50, 0.0 }
 0x142   : > { %vm1457_vm12 = vcmp.ge.f32.partialorder %v1424_v55, 0.0  ;;  %v1470_v57 = vmul.f32 0.2, %v1424_v55  ;;  %v1482_v58 = vsel %vm1456_vm11, %v1421_v50, %v1469_v54 }
 0x144   : > { %v1483_v59 = vsel %vm1457_vm12, %v1424_v55, %v1470_v57 }
 0x145   : > { %v1428_v60 = vpop.f32.mrb[44].mxu1  ;;  %v2106_v62 = vpack.c.bf16 %v1483_v59, %v1482_v58 }
 0x146   : > { %v1429_v63 = vadd.f32 %v2500_v12, %v1428_v60  ;;  %v1430_v0 = vpop.f32.mrb[45].mxu1 }
 0x147   : > { %v1431_v51 = vpop.f32.mrb[46].mxu1  ;;  %2107 = vmatprep.subr.bf16.mxu0 %v2106_v62 }
 0x148   : > { %v1471_v1 = vmul.f32 0.2, %v1429_v63  ;;  %v1432_v2 = vadd.f32 %v2500_v12, %v1431_v51  ;;  %v1433_v3 = vpop.f32.mrb[47].mxu1  ;;  %2109 = vmatpush3.bf16.msra.mxu0 %v2106_v62  ;;  %vm1458_vm13 = vcmp.ge.f32.partialorder %v1429_v63, 0.0 }
 0x14a   : > { %vm1459_vm14 = vcmp.ge.f32.partialorder %v1432_v2, 0.0  ;;  %v1472_v4 = vmul.f32 0.2, %v1432_v2  ;;  %v1484_v5 = vsel %vm1458_vm13, %v1429_v63, %v1471_v1 }
 0x14c   : > { %v1485_v6 = vsel %vm1459_vm14, %v1432_v2, %v1472_v4 }
 0x14d   : > { %v1436_v8 = vpop.f32.mrb[48].mxu1  ;;  %v2110_v9 = vpack.c.bf16 %v1485_v6, %v1484_v5 }
 0x14e   : > { %v1437_v10 = vadd.f32 %v2500_v12, %v1436_v8  ;;  %v1438_v11 = vpop.f32.mrb[49].mxu1 }
 0x14f   : > { %v1439_v13 = vpop.f32.mrb[50].mxu1  ;;  %2111 = vmatprep.subr.bf16.mxu0 %v2110_v9 }
 0x150   : > { %v1473_v25 = vmul.f32 0.2, %v1437_v10  ;;  %v1440_v14 = vadd.f32 %v2500_v12, %v1439_v13  ;;  %v1441_v15 = vpop.f32.mrb[51].mxu1  ;;  %2113 = vmatpush3.bf16.msra.mxu0 %v2110_v9  ;;  %vm1460_vm0 = vcmp.ge.f32.partialorder %v1437_v10, 0.0 }
 0x152   : > { %vm1461_vm1 = vcmp.ge.f32.partialorder %v1440_v14, 0.0  ;;  %v1474_v16 = vmul.f32 0.2, %v1440_v14  ;;  %v1486_v17 = vsel %vm1460_vm0, %v1437_v10, %v1473_v25 }
 0x154   : > { %v1487_v47 = vsel %vm1461_vm1, %v1440_v14, %v1474_v16 }
 0x155   : > { %v1444_v18 = vpop.f32.mrb[52].mxu1  ;;  %v2114_v19 = vpack.c.bf16 %v1487_v47, %v1486_v17 }
 0x156   : > { %v1445_v20 = vadd.f32 %v2500_v12, %v1444_v18  ;;  %v1446_v7 = vpop.f32.mrb[53].mxu1 }
 0x157   : > { %v1447_v21 = vpop.f32.mrb[54].mxu1  ;;  %2115 = vmatprep.subr.bf16.mxu0 %v2114_v19 }
 0x158   : > { %vm1462_vm2 = vcmp.ge.f32.partialorder %v1445_v20, 0.0  ;;  %v1475_v22 = vmul.f32 0.2, %v1445_v20  ;;  %v1448_v23 = vpop.f32.mrb[55].mxu1  ;;  %2117 = vmatpush3.bf16.msra.mxu0 %v2114_v19 }
 0x15a   : > { %v1488_v24 = vsel %vm1462_vm2, %v1445_v20, %v1475_v22 }
 0x15b   : > { %2041 = vmatprep.subr.msk.mxu0 %vm769_vm15, %v1488_v24 }
 0x15c   : > { %2042 = vmatpush3.msk.msra.mxu0 %vm769_vm15, %v1488_v24 }
 0x15d   : > { %2044 = vmatmul.mubr.msk.f32.vlgmr.msra.gmra.mrb[32].mxu0 %vm762_vm5, %v1490_v26 }
 0x1f0   : > { %v1949_v12 = vpop.f32.mrb[28].mxu0 }
 0x1f1   : > { %850 = vst.msk [vmem:[%s522_s15 + $0x8] sm:$0xff] %vm848_vm4, %v1949_v12  ;;  %v839_v27 = vpop.f32.mrb[29].mxu0 }
 0x1f2   : > { %849 = vst.msk [vmem:[%s522_s15] sm:$0xff] %vm848_vm4, %v839_v27 }
 0x20a   : > { %v2016_v28 = vpop.f32.mrb[30].mxu0 }
 0x20b   : > { %1180 = vst.msk [vmem:[%s527_s19 + $0x8] sm:$0xff] %vm848_vm4, %v2016_v28  ;;  %v1170_v61 = vpop.f32.mrb[31].mxu0 }
 0x20c   : > { %1179 = vst.msk [vmem:[%s527_s19] sm:$0xff] %vm848_vm4, %v1170_v61 }
 0x230   : > { %v2045_v29 = vpop.f32.mrb[32].mxu0 }
 0x231   : > { %1576 = vst.msk [vmem:[%s532_s22 + $0x8] sm:$0xff] %vm848_vm4, %v2045_v29  ;;  %v1566_v30 = vpop.f32.mrb[33].mxu0 }
 0x232   : > { %1575 = vst.msk [vmem:[%s532_s22] sm:$0xff] %vm848_vm4, %v1566_v30 }
 0x233 PF: > { %s25_s29 = sadd.s32 1, %s2189_s29  }
 0x234   : > { %p22_p4 = scmp.ge.s32.totalorder %s25_s29, 4  }
 0x236   :  { %24 = sbr.rel (!%p22_p4) target bundleno = 1 (0x1), region = 128 }

// kernel: watermark_forward.3
= control target key start
LH: loop header
LB: loop body
LE: loop exit
PB: predicated region body
PF: predicated region fallthrough
CT: control target
= control target key end

     0   :  { %s3614_s0 = inlined_call_operand.vmem [shape: bf16[2,512], index: 0, kind: input, shape index: {}]   ;;  %s3615_s1 = inlined_call_operand.vmem [shape: bf16[2,512], index: 1, kind: input, shape index: {}]   ;;  %s3616_s2 = inlined_call_operand.vmem [shape: bf16[2,512], index: 2, kind: input, shape index: {}]   ;;  %s3617_s3 = inlined_call_operand.vmem [shape: bf16[512,128], index: 3, kind: input, shape index: {}]   ;;  %s3618_s4 = inlined_call_operand.vmem [shape: bf16[512,128], index: 4, kind: input, shape index: {}]   ;;  %s3619_s5 = inlined_call_operand.vmem [shape: bf16[512,128], index: 5, kind: input, shape index: {}]   ;;  %s3620_s6 = inlined_call_operand.vmem [shape: f32[1,128], index: 6, kind: input, shape index: {}]   ;;  %s3621_s7 = inlined_call_operand.vmem [shape: f32[1,128], index: 7, kind: input, shape index: {}]   ;;  %s3622_s8 = inlined_call_operand.vmem [shape: f32[1,128], index: 8, kind: input, shape index: {}]   ;;  %s3623_s9 = inlined_call_operand.vmem [shape: f32[128,256], index: 9, kind: input, shape index: {}]   ;;  %s3624_s10 = inlined_call_operand.vmem [shape: f32[128,256], index: 10, kind: input, shape index: {}]   ;;  %s3625_s11 = inlined_call_operand.vmem [shape: f32[128,256], index: 11, kind: input, shape index: {}]   ;;  %s3626_s12 = inlined_call_operand.vmem [shape: f32[1,256], index: 12, kind: input, shape index: {}]   ;;  %s3627_s13 = inlined_call_operand.vmem [shape: f32[256,3], index: 13, kind: input, shape index: {}]   ;;  %s3628_s14 = inlined_call_operand.vmem [shape: f32[1,3], index: 14, kind: input, shape index: {}]   ;;  %s3629_s15 = inlined_call_operand.vmem [shape: f32[128,256], index: 15, kind: input, shape index: {}]   ;;  %s3630_s16 = inlined_call_operand.vmem [shape: f32[1,256], index: 16, kind: input, shape index: {}]   ;;  %s3631_s17 = inlined_call_operand.vmem [shape: f32[256,33], index: 17, kind: input, shape index: {}]   ;;  %s3632_s18 = inlined_call_operand.vmem [shape: f32[1,33], index: 18, kind: input, shape index: {}]   ;;  %s3633_s19 = inlined_call_operand.vmem [shape: f32[2,1], index: 19, kind: output, shape index: {0}]   ;;  %s3634_s20 = inlined_call_operand.hbm [shape: f32[2,32], index: 20, kind: output, shape index: {1}]  }
   0x1   :  { %3637 = sst [smem:[#allocation5_spill]] %s3614_s0 }
   0x2   :  { %3638 = sst [smem:[#allocation6_spill]] %s3615_s1 }
   0x3   :  { %3639 = sst [smem:[#allocation7_spill]] %s3616_s2 }
   0x4   :  { %3640 = sst [smem:[#allocation8_spill]] %s3617_s3 }
   0x5   :  { %3641 = sst [smem:[#allocation9_spill]] %s3618_s4 }
   0x6   :  { %s3642_s23 = sld [smem:[#allocation8_spill]]  ;;  %v150_v30 = vlaneseq  ;;  %s3643_s29 = sld [smem:[#allocation5_spill]]  ;;  %v2556_v34 = vmov 1966171168  }
   0x7   :  { %v148_v35 = vunpack.c.l.s4 %v2556_v34  ;;  %s3644_s21 = sld [smem:[#allocation9_spill]]  ;;  %v2503_v34 = vld [vmem:[%s3619_s5 + $0x98] sm:$0xff]   ;;  %s3646_s0 = sld [smem:[#allocation7_spill]] }
   0x8   :  { %v2767_v36 = vshrl.u32 %v150_v30, 7  ;;  %v2499_v30 = vld [vmem:[%s3619_s5 + $0x90] sm:$0xff]  }
   0x9   :  { %v149_v40 = vunpack.c.0.s8 %v148_v35  ;;  %v2505_v35 = vld [vmem:[%s3619_s5 + $0xe0] sm:$0xff]  }
   0xb   :  { %v2776_v41 = vsub.s32 %v149_v40, %v2767_v36  ;;  %v2509_v40 = vld [vmem:[%s3619_s5 + $0xe8] sm:$0xff]  }
   0xc   :  { %v2424_v0 = vld [vmem:[%s3642_s23 + $0x40] sm:$0xff]   ;;  %v2428_v4 = vld [vmem:[%s3642_s23 + $0x48] sm:$0xff]   ;;  %v2432_v8 = vld [vmem:[%s3642_s23 + $0x50] sm:$0xff]  }
   0xd   :  { %v2425_v1 = vld [vmem:[%s3642_s23 + $0xc0] sm:$0xff]   ;;  %2014 = vmatprep.subr.bf16.mxu0 %v2424_v0  ;;  %v2429_v5 = vld [vmem:[%s3642_s23 + $0xc8] sm:$0xff]   ;;  %v2433_v9 = vld [vmem:[%s3642_s23 + $0xd0] sm:$0xff]  }
   0xe   :  { %v2426_v2 = vld [vmem:[%s3642_s23] sm:$0xff]   ;;  %2036 = vmatprep.subr.bf16.mxu1 %v2425_v1  ;;  %v2430_v6 = vld [vmem:[%s3642_s23 + $0x8] sm:$0xff]   ;;  %v2434_v10 = vld [vmem:[%s3642_s23 + $0x10] sm:$0xff]  }
   0xf   :  { %v2427_v3 = vld [vmem:[%s3642_s23 + $0x80] sm:$0xff]   ;;  %2015 = vmatpush3.bf16.msra.mxu0 %v2426_v2  ;;  %v2431_v7 = vld [vmem:[%s3642_s23 + $0x88] sm:$0xff]   ;;  %v2435_v11 = vld [vmem:[%s3642_s23 + $0x90] sm:$0xff]  }
  0x10   :  { %2037 = vmatpush3.bf16.msra.mxu1 %v2427_v3  ;;  %2016 = vmatprep.subr.bf16.mxu0 %v2428_v4  ;;  %v2436_v12 = vld [vmem:[%s3642_s23 + $0x58] sm:$0xff]   ;;  %v2440_v16 = vld [vmem:[%s3642_s23 + $0x60] sm:$0xff]   ;;  %v2444_v20 = vld [vmem:[%s3642_s23 + $0x68] sm:$0xff]  }
  0x11   :  { %2038 = vmatprep.subr.bf16.mxu1 %v2429_v5  ;;  %v2437_v13 = vld [vmem:[%s3642_s23 + $0xd8] sm:$0xff]   ;;  %v2441_v17 = vld [vmem:[%s3642_s23 + $0xe0] sm:$0xff]   ;;  %v2445_v21 = vld [vmem:[%s3642_s23 + $0xe8] sm:$0xff]  }
  0x12   :  { %v2438_v14 = vld [vmem:[%s3642_s23 + $0x18] sm:$0xff]   ;;  %v2442_v18 = vld [vmem:[%s3642_s23 + $0x20] sm:$0xff]   ;;  %v2446_v22 = vld [vmem:[%s3642_s23 + $0x28] sm:$0xff]  }
  0x13   :  { %2017 = vmatpush3.bf16.msra.mxu0 %v2430_v6  ;;  %v2439_v15 = vld [vmem:[%s3642_s23 + $0x98] sm:$0xff]   ;;  %v2443_v19 = vld [vmem:[%s3642_s23 + $0xa0] sm:$0xff]   ;;  %v2447_v23 = vld [vmem:[%s3642_s23 + $0xa8] sm:$0xff]  }
  0x14   :  { %2039 = vmatpush3.bf16.msra.mxu1 %v2431_v7  ;;  %2018 = vmatprep.subr.bf16.mxu0 %v2432_v8  ;;  %v2448_v24 = vld [vmem:[%s3642_s23 + $0x70] sm:$0xff]   ;;  %v2452_v28 = vld [vmem:[%s3642_s23 + $0x78] sm:$0xff]   ;;  %v1911_v33 = vld.sshfl [vmem:[%s3643_s29] sm:$0x33 pattern:$0x75316420] }
  0x15   :  { %2040 = vmatprep.subr.bf16.mxu1 %v2433_v9  ;;  %v2449_v25 = vld [vmem:[%s3642_s23 + $0xf0] sm:$0xff]   ;;  %v2453_v29 = vld [vmem:[%s3642_s23 + $0xf8] sm:$0xff]   ;;  %v2456_v37 = vld [vmem:[%s3644_s21 + $0x40] sm:$0xff]   ;;  %v146_v39 = vcombine.high %v1911_v33, %v1911_v33  ;;  %v153_v44 = vrot.slane %v1911_v33, %v2776_v41 }
  0x16   :  { %v2450_v26 = vld [vmem:[%s3642_s23 + $0x30] sm:$0xff]   ;;  %v2454_v31 = vld [vmem:[%s3642_s23 + $0x38] sm:$0xff]   ;;  %v2457_v38 = vld [vmem:[%s3644_s21 + $0xc0] sm:$0xff]  }
  0x17   :  { %2019 = vmatpush3.bf16.msra.mxu0 %v2434_v10  ;;  %v2451_v27 = vld [vmem:[%s3642_s23 + $0xb0] sm:$0xff]   ;;  %v2455_v32 = vld [vmem:[%s3642_s23 + $0xb8] sm:$0xff]   ;;  %v2458_v42 = vld [vmem:[%s3644_s21] sm:$0xff]   ;;  %v160_v43 = vrot.slane %v146_v39, %v2776_v41  ;;  %v161_v48 = vcombine.high %v153_v44, %v153_v44  ;;  %s3645_s23 = sld [smem:[#allocation6_spill]] }
  0x18   :  { %2041 = vmatpush3.bf16.msra.mxu1 %v2435_v11  ;;  %2020 = vmatprep.subr.bf16.mxu0 %v2436_v12  ;;  %v2459_v45 = vld [vmem:[%s3644_s21 + $0x80] sm:$0xff]   ;;  %v2460_v46 = vld [vmem:[%s3644_s21 + $0x48] sm:$0xff]   ;;  %v2464_v52 = vld [vmem:[%s3644_s21 + $0x50] sm:$0xff]  }
  0x19   :  { %2042 = vmatprep.subr.bf16.mxu1 %v2437_v13  ;;  %391 = vmatprep.mubr.bf16.mxu0 %v160_v43  ;;  %v162_v47 = vcombine.high %v160_v43, %v160_v43  ;;  %v2461_v49 = vld [vmem:[%s3644_s21 + $0xc8] sm:$0xff]   ;;  %v2465_v53 = vld [vmem:[%s3644_s21 + $0xd0] sm:$0xff]   ;;  %v2468_v56 = vld [vmem:[%s3644_s21 + $0x58] sm:$0xff]  }
  0x1a   :  { %v2462_v50 = vld [vmem:[%s3644_s21 + $0x8] sm:$0xff]   ;;  %v2466_v54 = vld [vmem:[%s3644_s21 + $0x10] sm:$0xff]   ;;  %v2469_v57 = vld [vmem:[%s3644_s21 + $0xd8] sm:$0xff]  }
  0x1b   :  { %2021 = vmatpush3.bf16.msra.mxu0 %v2438_v14  ;;  %431 = vmatprep.mubr.bf16.mxu1 %v162_v47  ;;  %v2463_v51 = vld [vmem:[%s3644_s21 + $0x88] sm:$0xff]   ;;  %v2467_v55 = vld [vmem:[%s3644_s21 + $0x90] sm:$0xff]   ;;  %v2470_v58 = vld [vmem:[%s3644_s21 + $0x18] sm:$0xff]  }
  0x1c   :  { %2043 = vmatpush3.bf16.msra.mxu1 %v2439_v15  ;;  %2022 = vmatprep.subr.bf16.mxu0 %v2440_v16  ;;  %v2471_v59 = vld [vmem:[%s3644_s21 + $0x98] sm:$0xff]   ;;  %v2472_v60 = vld [vmem:[%s3644_s21 + $0x60] sm:$0xff]   ;;  %v2476_v0 = vld [vmem:[%s3644_s21 + $0x68] sm:$0xff]  }
  0x1d   :  { %2044 = vmatprep.subr.bf16.mxu1 %v2441_v17  ;;  %v2473_v61 = vld [vmem:[%s3644_s21 + $0xe0] sm:$0xff]   ;;  %v2477_v1 = vld [vmem:[%s3644_s21 + $0xe8] sm:$0xff]   ;;  %v2480_v4 = vld [vmem:[%s3644_s21 + $0x70] sm:$0xff]  }
  0x1e   :  { %v2474_v62 = vld [vmem:[%s3644_s21 + $0x20] sm:$0xff]   ;;  %v2478_v2 = vld [vmem:[%s3644_s21 + $0x28] sm:$0xff]   ;;  %v2481_v5 = vld [vmem:[%s3644_s21 + $0xf0] sm:$0xff]  }
  0x1f   :  { %2023 = vmatpush3.bf16.msra.mxu0 %v2442_v18  ;;  %v2475_v63 = vld [vmem:[%s3644_s21 + $0xa0] sm:$0xff]   ;;  %v2479_v3 = vld [vmem:[%s3644_s21 + $0xa8] sm:$0xff]   ;;  %v2482_v6 = vld [vmem:[%s3644_s21 + $0x30] sm:$0xff]  }
  0x20   :  { %2045 = vmatpush3.bf16.msra.mxu1 %v2443_v19  ;;  %2024 = vmatprep.subr.bf16.mxu0 %v2444_v20  ;;  %v2483_v7 = vld [vmem:[%s3644_s21 + $0xb0] sm:$0xff]   ;;  %v2484_v8 = vld [vmem:[%s3644_s21 + $0x78] sm:$0xff]   ;;  %v1945_v9 = vld.sshfl [vmem:[%s3645_s23] sm:$0x33 pattern:$0x75316420] }
  0x21   :  { %2046 = vmatprep.subr.bf16.mxu1 %v2445_v21  ;;  %v2485_v10 = vld [vmem:[%s3644_s21 + $0xf8] sm:$0xff]   ;;  %v519_v11 = vcombine.high %v1945_v9, %v1945_v9  ;;  %v526_v14 = vrot.slane %v1945_v9, %v2776_v41  ;;  %v2488_v15 = vld [vmem:[%s3619_s5 + $0x40] sm:$0xff]   ;;  %v2492_v21 = vld [vmem:[%s3619_s5 + $0x48] sm:$0xff]  }
  0x22   :  { %v2486_v12 = vld [vmem:[%s3644_s21 + $0x38] sm:$0xff]   ;;  %v2489_v18 = vld [vmem:[%s3619_s5 + $0xc0] sm:$0xff]   ;;  %v2512_v43 = vld [vmem:[%s3619_s5 + $0x70] sm:$0xff]  }
  0x23   :  { %2025 = vmatpush3.bf16.msra.mxu0 %v2446_v22  ;;  %v533_v13 = vrot.slane %v519_v11, %v2776_v41  ;;  %v2487_v16 = vld [vmem:[%s3644_s21 + $0xb8] sm:$0xff]   ;;  %v2490_v19 = vld [vmem:[%s3619_s5] sm:$0xff]   ;;  %v534_v20 = vcombine.high %v526_v14, %v526_v14 }
  0x24   :  { %2047 = vmatpush3.bf16.msra.mxu1 %v2447_v23  ;;  %2026 = vmatprep.subr.bf16.mxu0 %v2448_v24  ;;  %v2491_v22 = vld [vmem:[%s3619_s5 + $0x80] sm:$0xff]   ;;  %v2493_v23 = vld [vmem:[%s3619_s5 + $0xc8] sm:$0xff]   ;;  %v2516_v47 = vld [vmem:[%s3619_s5 + $0x78] sm:$0xff]  }
  0x25   :  { %2048 = vmatprep.subr.bf16.mxu1 %v2449_v25  ;;  %v535_v17 = vcombine.high %v533_v13, %v533_v13  ;;  %v2494_v24 = vld [vmem:[%s3619_s5 + $0x8] sm:$0xff]   ;;  %v2496_v25 = vld [vmem:[%s3619_s5 + $0x50] sm:$0xff]   ;;  %v2504_v33 = vld [vmem:[%s3619_s5 + $0x60] sm:$0xff]  }
  0x26   :  { %v2507_v39 = vld [vmem:[%s3619_s5 + $0xa0] sm:$0xff]  }
  0x27   :  { %2027 = vmatpush3.bf16.msra.mxu0 %v2450_v26  ;;  %v2495_v26 = vld [vmem:[%s3619_s5 + $0x88] sm:$0xff]  }
  0x28   :  { %2049 = vmatpush3.bf16.msra.mxu1 %v2451_v27  ;;  %2028 = vmatprep.subr.bf16.mxu0 %v2452_v28  ;;  %v2497_v27 = vld [vmem:[%s3619_s5 + $0xd0] sm:$0xff]  }
  0x29   :  { %2050 = vmatprep.subr.bf16.mxu1 %v2453_v29  ;;  %v2498_v28 = vld [vmem:[%s3619_s5 + $0x10] sm:$0xff]   ;;  %v2500_v29 = vld [vmem:[%s3619_s5 + $0x58] sm:$0xff]  }
  0x2b   :  { %2029 = vmatpush3.bf16.msra.mxu0 %v2454_v31  ;;  %v2501_v31 = vld [vmem:[%s3619_s5 + $0xd8] sm:$0xff]  }
  0x2c   :  { %2051 = vmatpush3.bf16.msra.mxu1 %v2455_v32  ;;  %2058 = vmatprep.subr.bf16.mxu0 %v2456_v37  ;;  %v2502_v32 = vld [vmem:[%s3619_s5 + $0x18] sm:$0xff]   ;;  %v2506_v37 = vld [vmem:[%s3619_s5 + $0x20] sm:$0xff]  }
  0x2d   :  { %2080 = vmatprep.subr.bf16.mxu1 %v2457_v38  ;;  %v2508_v38 = vld [vmem:[%s3619_s5 + $0x68] sm:$0xff]  }
  0x2e   :  { %392 = vmatmul.mubr.bf16.vlgmr.msra.gmra.mrb[0].mxu0 %v153_v44  ;;  %v2511_v44 = vld [vmem:[%s3619_s5 + $0xa8] sm:$0xff]  }
  0x2f   :  { %2059 = vmatpush3.bf16.msra.mxu0 %v2458_v42  ;;  %432 = vmatmul.mubr.bf16.vlgmr.msra.gmra.mrb[0].mxu1 %v161_v48  ;;  %v2510_v42 = vld [vmem:[%s3619_s5 + $0x28] sm:$0xff]   ;;  %v2515_v48 = vld [vmem:[%s3619_s5 + $0xb0] sm:$0xff]  }
  0x30   :  { %2060 = vmatprep.subr.bf16.mxu0 %v2460_v46  ;;  %2081 = vmatpush3.bf16.msra.mxu1 %v2459_v45  ;;  %v2513_v45 = vld [vmem:[%s3619_s5 + $0xf0] sm:$0xff]  }
  0x31   :  { %2082 = vmatprep.subr.bf16.mxu1 %v2461_v49  ;;  %764 = vmatprep.mubr.bf16.mxu0 %v533_v13  ;;  %v2514_v46 = vld [vmem:[%s3619_s5 + $0x30] sm:$0xff]   ;;  %v1187_v49 = vld [vmem:[%s3623_s9 + $0x8] sm:$0xff] }
  0x32   :  { %804 = vmatprep.mubr.bf16.mxu1 %v535_v17 }
  0x33   :  { %2061 = vmatpush3.bf16.msra.mxu0 %v2462_v50  ;;  %v2517_v50 = vld [vmem:[%s3619_s5 + $0xf8] sm:$0xff]  }
  0x34   :  { %2062 = vmatprep.subr.bf16.mxu0 %v2464_v52  ;;  %2083 = vmatpush3.bf16.msra.mxu1 %v2463_v51  ;;  %v1979_v51 = vld.sshfl [vmem:[%s3646_s0] sm:$0x33 pattern:$0x75316420]  ;;  %v1189_v52 = vld [vmem:[%s3623_s9 + $0x18] sm:$0xff] }
  0x35   :  { %2084 = vmatprep.subr.bf16.mxu1 %v2465_v53  ;;  %v2518_v53 = vld [vmem:[%s3619_s5 + $0x38] sm:$0xff]  }
  0x37   :  { %2063 = vmatpush3.bf16.msra.mxu0 %v2466_v54  ;;  %v892_v54 = vcombine.high %v1979_v51, %v1979_v51 }
  0x38   :  { %2064 = vmatprep.subr.bf16.mxu0 %v2468_v56  ;;  %2085 = vmatpush3.bf16.msra.mxu1 %v2467_v55  ;;  %v899_v55 = vrot.slane %v1979_v51, %v2776_v41  ;;  %v2216_v56 = vpack.c.bf16 %v1189_v52, %v1187_v49 }
  0x39   :  { %2086 = vmatprep.subr.bf16.mxu1 %v2469_v57  ;;  %v1186_v57 = vld [vmem:[%s3623_s9] sm:$0xff] }
  0x3b   :  { %2065 = vmatpush3.bf16.msra.mxu0 %v2470_v58  ;;  %v1188_v58 = vld [vmem:[%s3623_s9 + $0x10] sm:$0xff] }
  0x3c   :  { %2066 = vmatprep.subr.bf16.mxu0 %v2472_v60  ;;  %2087 = vmatpush3.bf16.msra.mxu1 %v2471_v59  ;;  %v2519_v59 = vld [vmem:[%s3619_s5 + $0xb8] sm:$0xff]   ;;  %v906_v60 = vrot.slane %v892_v54, %v2776_v41  ;;  %v1190_v41 = vld [vmem:[%s3623_s9 + $0x20] sm:$0xff] }
  0x3d   :  { %2088 = vmatprep.subr.bf16.mxu1 %v2473_v61  ;;  %v1191_v61 = vld [vmem:[%s3623_s9 + $0x28] sm:$0xff] }
  0x3f   :  { %2067 = vmatpush3.bf16.msra.mxu0 %v2474_v62  ;;  %v1193_v62 = vld [vmem:[%s3623_s9 + $0x38] sm:$0xff] }
  0x40   :  { %2068 = vmatprep.subr.bf16.mxu0 %v2476_v0  ;;  %2089 = vmatpush3.bf16.msra.mxu1 %v2475_v63  ;;  %v908_v63 = vcombine.high %v906_v60, %v906_v60  ;;  %v2218_v0 = vpack.c.bf16 %v1188_v58, %v1186_v57 }
  0x41   :  { %2090 = vmatprep.subr.bf16.mxu1 %v2477_v1  ;;  %v907_v1 = vcombine.high %v899_v55, %v899_v55 }
  0x43   :  { %2069 = vmatpush3.bf16.msra.mxu0 %v2478_v2  ;;  %v2220_v2 = vpack.c.bf16 %v1193_v62, %v1191_v61 }
  0x44   :  { %2070 = vmatprep.subr.bf16.mxu0 %v2480_v4  ;;  %2091 = vmatpush3.bf16.msra.mxu1 %v2479_v3  ;;  %v1192_v3 = vld [vmem:[%s3623_s9 + $0x30] sm:$0xff]  ;;  %v1195_v4 = vld [vmem:[%s3623_s9 + $0x48] sm:$0xff] }
  0x45   :  { %2092 = vmatprep.subr.bf16.mxu1 %v2481_v5  ;;  %v1197_v5 = vld [vmem:[%s3623_s9 + $0x58] sm:$0xff] }
  0x47   :  { %2071 = vmatpush3.bf16.msra.mxu0 %v2482_v6 }
  0x48   :  { %2072 = vmatprep.subr.bf16.mxu0 %v2484_v8  ;;  %2093 = vmatpush3.bf16.msra.mxu1 %v2483_v7 }
  0x49   :  { %2094 = vmatprep.subr.bf16.mxu1 %v2485_v10 }
  0x4b   :  { %2073 = vmatpush3.bf16.msra.mxu0 %v2486_v12 }
  0x4c   :  { %2102 = vmatprep.subr.bf16.mxu0 %v2488_v15  ;;  %2095 = vmatpush3.bf16.msra.mxu1 %v2487_v16 }
  0x4d   :  { %2124 = vmatprep.subr.bf16.mxu1 %v2489_v18 }
  0x4e   :  { %765 = vmatmul.mubr.bf16.vlgmr.msra.gmra.mrb[4].mxu0 %v526_v14 }
  0x4f   :  { %2103 = vmatpush3.bf16.msra.mxu0 %v2490_v19  ;;  %805 = vmatmul.mubr.bf16.vlgmr.msra.gmra.mrb[4].mxu1 %v534_v20 }
  0x50   :  { %2104 = vmatprep.subr.bf16.mxu0 %v2492_v21  ;;  %2125 = vmatpush3.bf16.msra.mxu1 %v2491_v22 }
  0x51   :  { %2126 = vmatprep.subr.bf16.mxu1 %v2493_v23  ;;  %1137 = vmatprep.mubr.bf16.mxu0 %v906_v60 }
  0x52   :  { %1177 = vmatprep.mubr.bf16.mxu1 %v908_v63 }
  0x53   :  { %2105 = vmatpush3.bf16.msra.mxu0 %v2494_v24 }
  0x54   :  { %2106 = vmatprep.subr.bf16.mxu0 %v2496_v25  ;;  %2127 = vmatpush3.bf16.msra.mxu1 %v2495_v26 }
  0x55   :  { %2128 = vmatprep.subr.bf16.mxu1 %v2497_v27 }
  0x57   :  { %2107 = vmatpush3.bf16.msra.mxu0 %v2498_v28 }
  0x58   :  { %2108 = vmatprep.subr.bf16.mxu0 %v2500_v29  ;;  %2129 = vmatpush3.bf16.msra.mxu1 %v2499_v30 }
  0x59   :  { %2130 = vmatprep.subr.bf16.mxu1 %v2501_v31 }
  0x5b   :  { %2109 = vmatpush3.bf16.msra.mxu0 %v2502_v32 }
  0x5c   :  { %2110 = vmatprep.subr.bf16.mxu0 %v2504_v33  ;;  %2131 = vmatpush3.bf16.msra.mxu1 %v2503_v34 }
  0x5d   :  { %2132 = vmatprep.subr.bf16.mxu1 %v2505_v35 }
  0x5f   :  { %2111 = vmatpush3.bf16.msra.mxu0 %v2506_v37 }
  0x60   :  { %2112 = vmatprep.subr.bf16.mxu0 %v2508_v38  ;;  %2133 = vmatpush3.bf16.msra.mxu1 %v2507_v39 }
  0x61   :  { %2134 = vmatprep.subr.bf16.mxu1 %v2509_v40 }
  0x63   :  { %2113 = vmatpush3.bf16.msra.mxu0 %v2510_v42 }
  0x64   :  { %2114 = vmatprep.subr.bf16.mxu0 %v2512_v43  ;;  %2135 = vmatpush3.bf16.msra.mxu1 %v2511_v44 }
  0x65   :  { %2136 = vmatprep.subr.bf16.mxu1 %v2513_v45 }
  0x67   :  { %2115 = vmatpush3.bf16.msra.mxu0 %v2514_v46 }
  0x68   :  { %2116 = vmatprep.subr.bf16.mxu0 %v2516_v47  ;;  %2137 = vmatpush3.bf16.msra.mxu1 %v2515_v48 }
  0x69   :  { %2138 = vmatprep.subr.bf16.mxu1 %v2517_v50 }
  0x6b   :  { %2117 = vmatpush3.bf16.msra.mxu0 %v2518_v53 }
  0x6c   :  { %2217 = vmatprep.subr.bf16.mxu0 %v2216_v56  ;;  %2139 = vmatpush3.bf16.msra.mxu1 %v2519_v59 }
  0x6e   :  { %1138 = vmatmul.mubr.bf16.vlgmr.msra.gmra.mrb[8].mxu0 %v899_v55 }
  0x6f   :  { %26 = vsyncpa [#allocation3], 0  ;;  %2219 = vmatpush1.bf16.msra.mxu0 %v2218_v0  ;;  %v2222_v6 = vpack.c.bf16 %v1192_v3, %v1190_v41  ;;  %1178 = vmatmul.mubr.bf16.vlgmr.msra.gmra.mrb[8].mxu1 %v907_v1  ;;  %v2224_v7 = vpack.c.bf16 %v1197_v5, %v1195_v4  ;;  %v1194_v8 = vld [vmem:[%s3623_s9 + $0x40] sm:$0xff]  ;;  %v1196_v9 = vld [vmem:[%s3623_s9 + $0x50] sm:$0xff]  ;;  %v2557_v43 = vmov 0.0   ;;  %vm1623_vm0 = vcmask 17408  }
  0x70   :  { %2221 = vmatprep.subr.bf16.mxu0 %v2220_v2  ;;  %v1199_v10 = vld [vmem:[%s3623_s9 + $0x68] sm:$0xff]  ;;  %v1201_v11 = vld [vmem:[%s3623_s9 + $0x78] sm:$0xff]  ;;  %v2226_v12 = vpack.c.bf16 %v1196_v9, %v1194_v8  ;;  %v1198_v14 = vld [vmem:[%s3623_s9 + $0x60] sm:$0xff]  ;;  %1282 = vmatprep.mubr.f32.mxu0 %v2557_v43  ;;  %vm1884_vm1 = vcmask 1024   ;;  %s2562_s29 = smov [#allocation2]   ;;  %vm1890_vm2 = vcmask 254976  }
  0x71   :  { %v2228_v13 = vpack.c.bf16 %v1201_v11, %v1199_v10  ;;  %v1200_v15 = vld [vmem:[%s3623_s9 + $0x70] sm:$0xff]  ;;  %v1203_v16 = vld [vmem:[%s3623_s9 + $0x88] sm:$0xff]  ;;  %v1205_v17 = vld [vmem:[%s3623_s9 + $0x98] sm:$0xff]  ;;  %s1900_s30 = sshll.u32 %s2562_s29, 4  ;;  %s1901_s30 = int_to_ptr.vmem [resolvable:$true] %s1900_s30 }
  0x72   :  { %v2230_v18 = vpack.c.bf16 %v1200_v15, %v1198_v14  ;;  %v2232_v19 = vpack.c.bf16 %v1205_v17, %v1203_v16  ;;  %v1202_v20 = vld [vmem:[%s3623_s9 + $0x80] sm:$0xff]  ;;  %v1204_v21 = vld [vmem:[%s3623_s9 + $0x90] sm:$0xff]  ;;  %v1207_v22 = vld [vmem:[%s3623_s9 + $0xa8] sm:$0xff]  ;;  %p2537_p1 = scmp.lt.s32.totalorder %s1901_s30, %s1901_s30 }
  0x73   :  { %2223 = vmatpush1.bf16.msra.mxu0 %v2222_v6  ;;  %v1209_v23 = vld [vmem:[%s3623_s9 + $0xb8] sm:$0xff]  ;;  %v2234_v24 = vpack.c.bf16 %v1204_v21, %v1202_v20  ;;  %v1206_v26 = vld [vmem:[%s3623_s9 + $0xa0] sm:$0xff]  ;;  %v1208_v27 = vld [vmem:[%s3623_s9 + $0xb0] sm:$0xff] }
  0x74   :  { %2225 = vmatprep.subr.bf16.mxu0 %v2224_v7  ;;  %v2236_v25 = vpack.c.bf16 %v1209_v23, %v1207_v22  ;;  %v2238_v28 = vpack.c.bf16 %v1208_v27, %v1206_v26  ;;  %v1211_v29 = vld [vmem:[%s3623_s9 + $0xc8] sm:$0xff]  ;;  %v1213_v30 = vld [vmem:[%s3623_s9 + $0xd8] sm:$0xff]  ;;  %v1210_v32 = vld [vmem:[%s3623_s9 + $0xc0] sm:$0xff] }
  0x75   :  { %v2240_v31 = vpack.c.bf16 %v1213_v30, %v1211_v29  ;;  %v1212_v33 = vld [vmem:[%s3623_s9 + $0xd0] sm:$0xff]  ;;  %v1215_v35 = vld [vmem:[%s3623_s9 + $0xe8] sm:$0xff]  ;;  %v1217_v37 = vld [vmem:[%s3623_s9 + $0xf8] sm:$0xff] }
  0x76   :  { %v2242_v34 = vpack.c.bf16 %v1212_v33, %v1210_v32  ;;  %v2244_v38 = vpack.c.bf16 %v1217_v37, %v1215_v35  ;;  %v1214_v39 = vld [vmem:[%s3623_s9 + $0xe0] sm:$0xff]  ;;  %v1216_v40 = vld [vmem:[%s3623_s9 + $0xf0] sm:$0xff]  ;;  %v1303_v44 = vld [vmem:[%s3624_s10 + $0x8] sm:$0xff] }
  0x77   :  { %2227 = vmatpush1.bf16.msra.mxu0 %v2226_v12  ;;  %v2246_v42 = vpack.c.bf16 %v1216_v40, %v1214_v39  ;;  %v1305_v45 = vld [vmem:[%s3624_s10 + $0x18] sm:$0xff]  ;;  %v1530_v47 = vld [vmem:[%s3627_s13 + $0x80] sm:$0xff]  ;;  %v1531_v48 = vld [vmem:[%s3627_s13 + $0x88] sm:$0xff] }
  0x78   :  { %2229 = vmatprep.subr.bf16.mxu0 %v2228_v13  ;;  %v2248_v46 = vpack.c.bf16 %v1305_v45, %v1303_v44  ;;  %v1514_v49 = vld [vmem:[%s3627_s13] sm:$0xff]  ;;  %v2312_v50 = vpack.c.bf16 %v1531_v48, %v1530_v47  ;;  %v1515_v51 = vld [vmem:[%s3627_s13 + $0x8] sm:$0xff]  ;;  %v1532_v52 = vld [vmem:[%s3627_s13 + $0x90] sm:$0xff] }
  0x79   :  { %v1533_v53 = vld [vmem:[%s3627_s13 + $0x98] sm:$0xff]  ;;  %v2314_v54 = vpack.c.bf16 %v1515_v51, %v1514_v49  ;;  %v1516_v56 = vld [vmem:[%s3627_s13 + $0x10] sm:$0xff]  ;;  %v1534_v58 = vld [vmem:[%s3627_s13 + $0xa0] sm:$0xff] }
  0x7a   :  { %v2316_v55 = vpack.c.bf16 %v1533_v53, %v1532_v52  ;;  %v1517_v57 = vld [vmem:[%s3627_s13 + $0x18] sm:$0xff]  ;;  %2313 = vmatprep.subr.bf16.mxu1 %v2312_v50  ;;  %v1535_v59 = vld [vmem:[%s3627_s13 + $0xa8] sm:$0xff]  ;;  %v1518_v62 = vld [vmem:[%s3627_s13 + $0x20] sm:$0xff] }
  0x7b   :  { %2231 = vmatpush1.bf16.msra.mxu0 %v2230_v18  ;;  %2315 = vmatpush3.bf16.msra.mxu1 %v2314_v54  ;;  %v2318_v60 = vpack.c.bf16 %v1517_v57, %v1516_v56  ;;  %v2320_v61 = vpack.c.bf16 %v1535_v59, %v1534_v58  ;;  %v1519_v63 = vld [vmem:[%s3627_s13 + $0x28] sm:$0xff]  ;;  %v1536_v0 = vld [vmem:[%s3627_s13 + $0xb0] sm:$0xff]  ;;  %v1537_v1 = vld [vmem:[%s3627_s13 + $0xb8] sm:$0xff] }
  0x7c   :  { %2233 = vmatprep.subr.bf16.mxu0 %v2232_v19  ;;  %2317 = vmatprep.subr.bf16.mxu1 %v2316_v55  ;;  %v2322_v2 = vpack.c.bf16 %v1519_v63, %v1518_v62  ;;  %v2324_v41 = vpack.c.bf16 %v1537_v1, %v1536_v0  ;;  %v1520_v3 = vld [vmem:[%s3627_s13 + $0x30] sm:$0xff]  ;;  %v1521_v4 = vld [vmem:[%s3627_s13 + $0x38] sm:$0xff]  ;;  %v1910_v7 = vld [vmem:[%s3620_s6] ss:$0 sm:$0xff]  ;;  %s2561_s6 = smov 127  }
  0x7d   :  { %v2326_v5 = vpack.c.bf16 %v1521_v4, %v1520_v3  ;;  %v1302_v12 = vld [vmem:[%s3624_s10] sm:$0xff]  ;;  %v1304_v13 = vld [vmem:[%s3624_s10 + $0x10] sm:$0xff]  ;;  %v1307_v16 = vld [vmem:[%s3624_s10 + $0x28] sm:$0xff] }
  0x7e   :  { %v1309_v17 = vld [vmem:[%s3624_s10 + $0x38] sm:$0xff]  ;;  %v2250_v22 = vpack.c.bf16 %v1304_v13, %v1302_v12  ;;  %v1308_v26 = vld [vmem:[%s3624_s10 + $0x30] sm:$0xff]  ;;  %v1311_v27 = vld [vmem:[%s3624_s10 + $0x48] sm:$0xff] }
  0x7f   :  { %2235 = vmatpush1.bf16.msra.mxu0 %v2234_v24  ;;  %2319 = vmatpush3.bf16.msra.mxu1 %v2318_v60  ;;  %v2252_v24 = vpack.c.bf16 %v1309_v17, %v1307_v16  ;;  %v1312_v32 = vld [vmem:[%s3624_s10 + $0x50] sm:$0xff]  ;;  %v1315_v33 = vld [vmem:[%s3624_s10 + $0x68] sm:$0xff]  ;;  %v1325_v49 = vld [vmem:[%s3624_s10 + $0xb8] sm:$0xff] }
  0x80   :  { %2237 = vmatprep.subr.bf16.mxu0 %v2236_v25  ;;  %2321 = vmatprep.subr.bf16.mxu1 %v2320_v61  ;;  %v1306_v25 = vld [vmem:[%s3624_s10 + $0x20] sm:$0xff]  ;;  %v1316_v39 = vld [vmem:[%s3624_s10 + $0x70] sm:$0xff]  ;;  %v1319_v40 = vld [vmem:[%s3624_s10 + $0x88] sm:$0xff] }
  0x81   :  { %v2254_v29 = vpack.c.bf16 %v1308_v26, %v1306_v25  ;;  %v1320_v47 = vld [vmem:[%s3624_s10 + $0x90] sm:$0xff]  ;;  %v1323_v48 = vld [vmem:[%s3624_s10 + $0xa8] sm:$0xff]  ;;  %v1322_v52 = vld [vmem:[%s3624_s10 + $0xa0] sm:$0xff] }
  0x82   :  { %v2268_v51 = vpack.c.bf16 %v1325_v49, %v1323_v48  ;;  %v1324_v53 = vld [vmem:[%s3624_s10 + $0xb0] sm:$0xff]  ;;  %v1327_v54 = vld [vmem:[%s3624_s10 + $0xc8] sm:$0xff]  ;;  %v1329_v55 = vld [vmem:[%s3624_s10 + $0xd8] sm:$0xff] }
  0x83   :  { %2239 = vmatpush1.bf16.msra.mxu0 %v2238_v28  ;;  %2323 = vmatpush3.bf16.msra.mxu1 %v2322_v2  ;;  %v1313_v28 = vld [vmem:[%s3624_s10 + $0x58] sm:$0xff]  ;;  %v2270_v56 = vpack.c.bf16 %v1324_v53, %v1322_v52  ;;  %v2272_v57 = vpack.c.bf16 %v1329_v55, %v1327_v54  ;;  %v1326_v58 = vld [vmem:[%s3624_s10 + $0xc0] sm:$0xff]  ;;  %v1328_v59 = vld [vmem:[%s3624_s10 + $0xd0] sm:$0xff] }
  0x84   :  { %2241 = vmatprep.subr.bf16.mxu0 %v2240_v31  ;;  %2325 = vmatprep.subr.bf16.mxu1 %v2324_v41  ;;  %v2256_v30 = vpack.c.bf16 %v1313_v28, %v1311_v27  ;;  %v1310_v31 = vld [vmem:[%s3624_s10 + $0x40] sm:$0xff]  ;;  %v1331_v60 = vld [vmem:[%s3624_s10 + $0xe8] sm:$0xff]  ;;  %v1333_v61 = vld [vmem:[%s3624_s10 + $0xf8] sm:$0xff]  ;;  %v2274_v62 = vpack.c.bf16 %v1328_v59, %v1326_v58 }
  0x85   :  { %v2258_v35 = vpack.c.bf16 %v1312_v32, %v1310_v31  ;;  %v2276_v63 = vpack.c.bf16 %v1333_v61, %v1331_v60  ;;  %v1330_v0 = vld [vmem:[%s3624_s10 + $0xe0] sm:$0xff]  ;;  %v1332_v1 = vld [vmem:[%s3624_s10 + $0xf0] sm:$0xff]  ;;  %v1408_v2 = vld [vmem:[%s3625_s11 + $0x8] sm:$0xff] }
  0x86   :  { %v1410_v41 = vld [vmem:[%s3625_s11 + $0x18] sm:$0xff]  ;;  %v1944_v4 = vld [vmem:[%s3621_s7] ss:$0 sm:$0xff]  ;;  %v1409_v12 = vld [vmem:[%s3625_s11 + $0x10] sm:$0xff] }
  0x87   :  { %2243 = vmatpush1.bf16.msra.mxu0 %v2242_v34  ;;  %2327 = vmatpush3.bf16.msra.mxu1 %v2326_v5  ;;  %v1317_v34 = vld [vmem:[%s3624_s10 + $0x78] sm:$0xff]  ;;  %v1411_v25 = vld [vmem:[%s3625_s11 + $0x20] sm:$0xff]  ;;  %v1413_v26 = vld [vmem:[%s3625_s11 + $0x30] sm:$0xff] }
  0x88   :  { %2245 = vmatprep.subr.bf16.mxu0 %v2244_v38  ;;  %v2260_v37 = vpack.c.bf16 %v1317_v34, %v1315_v33  ;;  %v1314_v38 = vld [vmem:[%s3624_s10 + $0x60] sm:$0xff]  ;;  %v1414_v16 = vld [vmem:[%s3625_s11 + $0x38] sm:$0xff]  ;;  %v1416_v27 = vld [vmem:[%s3625_s11 + $0x48] sm:$0xff] }
  0x89   :  { %v2262_v44 = vpack.c.bf16 %v1316_v39, %v1314_v38  ;;  %v1418_v28 = vld [vmem:[%s3625_s11 + $0x58] sm:$0xff]  ;;  %v1415_v31 = vld [vmem:[%s3625_s11 + $0x40] sm:$0xff]  ;;  %v1417_v32 = vld [vmem:[%s3625_s11 + $0x50] sm:$0xff] }
  0x8a   :  { %v1420_v33 = vld [vmem:[%s3625_s11 + $0x68] sm:$0xff]  ;;  %v1422_v34 = vld [vmem:[%s3625_s11 + $0x78] sm:$0xff]  ;;  %v1419_v38 = vld [vmem:[%s3625_s11 + $0x60] sm:$0xff] }
  0x8b   :  { %2247 = vmatpush1.bf16.msra.mxu0 %v2246_v42  ;;  %v1321_v42 = vld [vmem:[%s3624_s10 + $0x98] sm:$0xff]  ;;  %v1421_v39 = vld [vmem:[%s3625_s11 + $0x70] sm:$0xff]  ;;  %v1428_v48 = vld [vmem:[%s3625_s11 + $0xa8] sm:$0xff] }
  0x8c   :  { %2249 = vmatprep.subr.bf16.mxu0 %v2248_v46  ;;  %v2264_v45 = vpack.c.bf16 %v1321_v42, %v1319_v40  ;;  %v1318_v46 = vld [vmem:[%s3624_s10 + $0x80] sm:$0xff]  ;;  %v1424_v40 = vld [vmem:[%s3625_s11 + $0x88] sm:$0xff]  ;;  %v1426_v42 = vld [vmem:[%s3625_s11 + $0x98] sm:$0xff] }
  0x8d   :  { %v2266_v50 = vpack.c.bf16 %v1320_v47, %v1318_v46  ;;  %v1423_v46 = vld [vmem:[%s3625_s11 + $0x80] sm:$0xff]  ;;  %v1425_v47 = vld [vmem:[%s3625_s11 + $0x90] sm:$0xff]  ;;  %v1430_v49 = vld [vmem:[%s3625_s11 + $0xb8] sm:$0xff] }
  0x8e   :  { %v1427_v52 = vld [vmem:[%s3625_s11 + $0xa0] sm:$0xff]  ;;  %v1429_v53 = vld [vmem:[%s3625_s11 + $0xb0] sm:$0xff]  ;;  %v1432_v54 = vld [vmem:[%s3625_s11 + $0xc8] sm:$0xff] }
  0x8f   :  { %v1434_v55 = vld [vmem:[%s3625_s11 + $0xd8] sm:$0xff]  ;;  %v1431_v58 = vld [vmem:[%s3625_s11 + $0xc0] sm:$0xff]  ;;  %v1433_v59 = vld [vmem:[%s3625_s11 + $0xd0] sm:$0xff] }
  0x90   :  { %v1436_v60 = vld [vmem:[%s3625_s11 + $0xe8] sm:$0xff]  ;;  %v1438_v61 = vld [vmem:[%s3625_s11 + $0xf8] sm:$0xff] }
 0x101   :  { %v2030_v6 = vpop.f32.mrb[0].mxu0 }
 0x102   :  { %v2031_v8 = vpop.f32.mrb[1].mxu0  ;;  %v2052_v9 = vpop.f32.mrb[0].mxu1 }
 0x103   :  { %v2032_v10 = vadd.f32 %v2031_v8, %v2030_v6  ;;  %v2033_v11 = vpop.f32.mrb[2].mxu0  ;;  %v2053_v14 = vpop.f32.mrb[1].mxu1  ;;  %v2278_v6 = vpack.c.bf16 %v1332_v1, %v1330_v0  ;;  %v1435_v0 = vld [vmem:[%s3625_s11 + $0xe0] sm:$0xff]  ;;  %v1437_v1 = vld [vmem:[%s3625_s11 + $0xf0] sm:$0xff] }
 0x104   :  { %v2034_v15 = vpop.f32.mrb[3].mxu0  ;;  %v2054_v19 = vadd.f32 %v2053_v14, %v2052_v9  ;;  %v2055_v20 = vpop.f32.mrb[2].mxu1  ;;  %v1407_v11 = vld [vmem:[%s3625_s11] sm:$0xff] }
 0x105   :  { %v394_v18 = vadd.f32 %v2032_v10, %v1910_v7  ;;  %v2056_v21 = vpop.f32.mrb[3].mxu1  ;;  %v2280_v10 = vpack.c.bf16 %v1410_v41, %v1408_v2  ;;  %v1412_v15 = vld [vmem:[%s3625_s11 + $0x28] sm:$0xff]  ;;  %v1978_v41 = vld [vmem:[%s3622_s8] ss:$0 sm:$0xff] }
 0x106   :  { %v2282_v21 = vpack.c.bf16 %v1409_v12, %v1407_v11 }
 0x107   :  { %v3142_v23 = vadd.f32 %v2054_v19, %v394_v18 }
 0x109   :  { %1283 = vmatmul.mubr.f32.vlgmr.msra.gmra.mrb[12].mxu0 %v3142_v23 }
 0x10a   :  { %2251 = vmatpush1.bf16.msra.mxu0 %v2250_v22  ;;  %1398 = vmatprep.mubr.f32.mxu0 %v2557_v43 }
 0x10b   :  { %2253 = vmatprep.subr.bf16.mxu0 %v2252_v24  ;;  %v2284_v24 = vpack.c.bf16 %v1414_v16, %v1412_v15  ;;  %v1538_v15 = vld [vmem:[%s3627_s13 + $0xc0] sm:$0xff]  ;;  %v1539_v16 = vld [vmem:[%s3627_s13 + $0xc8] sm:$0xff] }
 0x10e   :  { %2255 = vmatpush1.bf16.msra.mxu0 %v2254_v29  ;;  %v2286_v29 = vpack.c.bf16 %v1413_v26, %v1411_v25  ;;  %v1524_v26 = vld [vmem:[%s3627_s13 + $0x50] sm:$0xff] }
 0x10f   :  { %2257 = vmatprep.subr.bf16.mxu0 %v2256_v30  ;;  %v2288_v30 = vpack.c.bf16 %v1418_v28, %v1416_v27  ;;  %v1525_v27 = vld [vmem:[%s3627_s13 + $0x58] sm:$0xff]  ;;  %v1542_v28 = vld [vmem:[%s3627_s13 + $0xe0] sm:$0xff] }
 0x112   :  { %2259 = vmatpush1.bf16.msra.mxu0 %v2258_v35  ;;  %v2290_v35 = vpack.c.bf16 %v1417_v32, %v1415_v31  ;;  %v1526_v31 = vld [vmem:[%s3627_s13 + $0x60] sm:$0xff]  ;;  %v1527_v32 = vld [vmem:[%s3627_s13 + $0x68] sm:$0xff] }
 0x113   :  { %2261 = vmatprep.subr.bf16.mxu0 %v2260_v37  ;;  %v2292_v37 = vpack.c.bf16 %v1422_v34, %v1420_v33  ;;  %v1544_v34 = vld [vmem:[%s3627_s13 + $0xf0] sm:$0xff] }
 0x116   :  { %2263 = vmatpush1.bf16.msra.mxu0 %v2262_v44  ;;  %v2294_v44 = vpack.c.bf16 %v1421_v39, %v1419_v38  ;;  %v1528_v39 = vld [vmem:[%s3627_s13 + $0x70] sm:$0xff] }
 0x117   :  { %2265 = vmatprep.subr.bf16.mxu0 %v2264_v45  ;;  %v2296_v45 = vpack.c.bf16 %v1426_v42, %v1424_v40  ;;  %v1529_v40 = vld [vmem:[%s3627_s13 + $0x78] sm:$0xff] }
 0x118   :  { %v2342_v42 = vpack.c.bf16 %v1529_v40, %v1528_v39 }
 0x11a   :  { %2267 = vmatpush1.bf16.msra.mxu0 %v2266_v50  ;;  %v2298_v50 = vpack.c.bf16 %v1425_v47, %v1423_v46  ;;  %v1296_v46 = vsub.s32 1, %v2767_v36 }
 0x11b   :  { %2269 = vmatprep.subr.bf16.mxu0 %v2268_v51  ;;  %v2300_v51 = vpack.c.bf16 %v1430_v49, %v1428_v48 }
 0x11e   :  { %2271 = vmatpush1.bf16.msra.mxu0 %v2270_v56  ;;  %v2302_v56 = vpack.c.bf16 %v1429_v53, %v1427_v52 }
 0x11f   :  { %2273 = vmatprep.subr.bf16.mxu0 %v2272_v57  ;;  %v2304_v57 = vpack.c.bf16 %v1434_v55, %v1432_v54 }
 0x121   :  { %v2074_v3 = vpop.f32.mrb[4].mxu0 }
 0x122   :  { %v2075_v5 = vpop.f32.mrb[5].mxu0  ;;  %2275 = vmatpush1.bf16.msra.mxu0 %v2274_v62  ;;  %v2096_v7 = vpop.f32.mrb[4].mxu1  ;;  %v2306_v62 = vpack.c.bf16 %v1433_v59, %v1431_v58 }
 0x123   :  { %v2076_v8 = vadd.f32 %v2075_v5, %v2074_v3  ;;  %v2077_v9 = vpop.f32.mrb[6].mxu0  ;;  %2277 = vmatprep.subr.bf16.mxu0 %v2276_v63  ;;  %v2097_v13 = vpop.f32.mrb[5].mxu1  ;;  %v2308_v63 = vpack.c.bf16 %v1438_v61, %v1436_v60 }
 0x124   :  { %v2078_v14 = vpop.f32.mrb[7].mxu0  ;;  %v2098_v18 = vadd.f32 %v2097_v13, %v2096_v7  ;;  %v2099_v19 = vpop.f32.mrb[6].mxu1 }
 0x125   :  { %v767_v17 = vadd.f32 %v2076_v8, %v1944_v4  ;;  %v2100_v20 = vpop.f32.mrb[7].mxu1  ;;  %v2310_v4 = vpack.c.bf16 %v1437_v1, %v1435_v0  ;;  %v1523_v19 = vld [vmem:[%s3627_s13 + $0x48] sm:$0xff] }
 0x126   :  { %2279 = vmatpush1.bf16.msra.mxu0 %v2278_v6 }
 0x127   :  { %v3245_v22 = vadd.f32 %v2098_v18, %v767_v17  ;;  %2281 = vmatprep.subr.bf16.mxu0 %v2280_v10  ;;  %v2328_v17 = vpack.c.bf16 %v1539_v16, %v1538_v15  ;;  %v1522_v18 = vld [vmem:[%s3627_s13 + $0x40] sm:$0xff]  ;;  %v1665_v15 = vld [vmem:[%s3629_s15 + $0x58] sm:$0xff] }
 0x128   :  { %v2330_v20 = vpack.c.bf16 %v1523_v19, %v1522_v18  ;;  %v1662_v18 = vld [vmem:[%s3629_s15 + $0x40] sm:$0xff]  ;;  %v1664_v19 = vld [vmem:[%s3629_s15 + $0x50] sm:$0xff] }
 0x129   :  { %1399 = vmatmul.mubr.f32.vlgmr.msra.gmra.mrb[12].mxu0 %v3245_v22  ;;  %2329 = vmatprep.subr.bf16.mxu1 %v2328_v17 }
 0x12a   :  { %2283 = vmatpush1.bf16.msra.mxu0 %v2282_v21  ;;  %1503 = vmatprep.mubr.f32.mxu0 %v2557_v43  ;;  %v1540_v21 = vld [vmem:[%s3627_s13 + $0xd0] sm:$0xff] }
 0x12b   :  { %2285 = vmatprep.subr.bf16.mxu0 %v2284_v24  ;;  %2331 = vmatpush3.bf16.msra.mxu1 %v2330_v20  ;;  %v1541_v24 = vld [vmem:[%s3627_s13 + $0xd8] sm:$0xff]  ;;  %v1667_v20 = vld [vmem:[%s3629_s15 + $0x68] sm:$0xff] }
 0x12c   :  { %v2332_v25 = vpack.c.bf16 %v1541_v24, %v1540_v21  ;;  %v1669_v21 = vld [vmem:[%s3629_s15 + $0x78] sm:$0xff]  ;;  %v2354_v24 = vpack.c.bf16 %v1664_v19, %v1662_v18  ;;  %v1774_v18 = vld [vmem:[%s3631_s17 + $0x28] sm:$0xff]  ;;  %v1791_v19 = vld [vmem:[%s3631_s17 + $0xb0] sm:$0xff] }
 0x12e   :  { %2287 = vmatpush1.bf16.msra.mxu0 %v2286_v29  ;;  %v2334_v29 = vpack.c.bf16 %v1525_v27, %v1524_v26  ;;  %2333 = vmatprep.subr.bf16.mxu1 %v2332_v25  ;;  %v2356_v25 = vpack.c.bf16 %v1669_v21, %v1667_v20  ;;  %v1666_v26 = vld [vmem:[%s3629_s15 + $0x60] sm:$0xff]  ;;  %v1668_v27 = vld [vmem:[%s3629_s15 + $0x70] sm:$0xff]  ;;  %v1792_v20 = vld [vmem:[%s3631_s17 + $0xb8] sm:$0xff] }
 0x12f   :  { %2289 = vmatprep.subr.bf16.mxu0 %v2288_v30  ;;  %v1543_v30 = vld [vmem:[%s3627_s13 + $0xe8] sm:$0xff] }
 0x130   :  { %v2336_v33 = vpack.c.bf16 %v1543_v30, %v1542_v28  ;;  %2335 = vmatpush3.bf16.msra.mxu1 %v2334_v29  ;;  %v1671_v28 = vld [vmem:[%s3629_s15 + $0x88] sm:$0xff]  ;;  %v1673_v29 = vld [vmem:[%s3629_s15 + $0x98] sm:$0xff]  ;;  %v2358_v30 = vpack.c.bf16 %v1668_v27, %v1666_v26  ;;  %v1793_v27 = vld [vmem:[%s3631_s17 + $0xc0] sm:$0xff] }
 0x131   :  { %v1776_v26 = vld [vmem:[%s3631_s17 + $0x38] sm:$0xff] }
 0x132   :  { %2291 = vmatpush1.bf16.msra.mxu0 %v2290_v35  ;;  %v1545_v35 = vld [vmem:[%s3627_s13 + $0xf8] sm:$0xff]  ;;  %2337 = vmatprep.subr.bf16.mxu1 %v2336_v33  ;;  %v1672_v33 = vld [vmem:[%s3629_s15 + $0x90] sm:$0xff] }
 0x133   :  { %2293 = vmatprep.subr.bf16.mxu0 %v2292_v37  ;;  %v2338_v37 = vpack.c.bf16 %v1527_v32, %v1526_v31  ;;  %v2340_v38 = vpack.c.bf16 %v1545_v35, %v1544_v34  ;;  %v2360_v31 = vpack.c.bf16 %v1673_v29, %v1671_v28  ;;  %v1670_v32 = vld [vmem:[%s3629_s15 + $0x80] sm:$0xff]  ;;  %v1675_v34 = vld [vmem:[%s3629_s15 + $0xa8] sm:$0xff]  ;;  %v1677_v35 = vld [vmem:[%s3629_s15 + $0xb8] sm:$0xff] }
 0x134   :  { %v1794_v28 = vld [vmem:[%s3631_s17 + $0xc8] sm:$0xff] }
 0x135   :  { %2339 = vmatpush3.bf16.msra.mxu1 %v2338_v37  ;;  %v2362_v37 = vpack.c.bf16 %v1672_v33, %v1670_v32  ;;  %v1778_v32 = vld [vmem:[%s3631_s17 + $0x48] sm:$0xff]  ;;  %v1795_v33 = vld [vmem:[%s3631_s17 + $0xd0] sm:$0xff] }
 0x136   :  { %2295 = vmatpush1.bf16.msra.mxu0 %v2294_v44  ;;  %2341 = vmatprep.subr.bf16.mxu1 %v2340_v38  ;;  %v1292_v44 = vsub.s32 0, %v2767_v36  ;;  %v2364_v38 = vpack.c.bf16 %v1677_v35, %v1675_v34  ;;  %v1796_v34 = vld [vmem:[%s3631_s17 + $0xd8] sm:$0xff] }
 0x137   :  { %2297 = vmatprep.subr.bf16.mxu0 %v2296_v45  ;;  %v1185_v45 = vld [vmem:[%s3626_s12] sm:$0x3] }
 0x138   :  { %v1293_v47 = vrot.slane %v1185_v45, %v1292_v44  ;;  %v1297_v48 = vrot.slane %v1185_v45, %v1296_v46  ;;  %v1674_v45 = vld [vmem:[%s3629_s15 + $0xa0] sm:$0xff] }
 0x139   :  { %2343 = vmatpush3.bf16.msra.mxu1 %v2342_v42 }
 0x13a   :  { %2299 = vmatpush1.bf16.msra.mxu0 %v2298_v50 }
 0x13b   :  { %2301 = vmatprep.subr.bf16.mxu0 %v2300_v51 }
 0x13e   :  { %2303 = vmatpush1.bf16.msra.mxu0 %v2302_v56 }
 0x13f   :  { %2305 = vmatprep.subr.bf16.mxu0 %v2304_v57  ;;  %v2012_v57 = vld [vmem:[%s3628_s14] ss:$0 sm:$0xff] }
 0x141   :  { %v2118_v2 = vpop.f32.mrb[8].mxu0 }
 0x142   :  { %v2119_v3 = vpop.f32.mrb[9].mxu0  ;;  %2307 = vmatpush1.bf16.msra.mxu0 %v2306_v62  ;;  %v2140_v5 = vpop.f32.mrb[8].mxu1 }
 0x143   :  { %v2120_v6 = vadd.f32 %v2119_v3, %v2118_v2  ;;  %v2121_v7 = vpop.f32.mrb[10].mxu0  ;;  %2309 = vmatprep.subr.bf16.mxu0 %v2308_v63  ;;  %v2141_v8 = vpop.f32.mrb[9].mxu1  ;;  %v2558_v2 = vmov 2   ;;  %v1657_v3 = vld [vmem:[%s3629_s15 + $0x18] sm:$0xff] }
 0x144   :  { %v2122_v9 = vpop.f32.mrb[11].mxu0  ;;  %v2142_v11 = vadd.f32 %v2141_v8, %v2140_v5  ;;  %v2143_v12 = vpop.f32.mrb[10].mxu1  ;;  %2423 = vset.pattern.permute.xlu0 %v2558_v2  ;;  %v1659_v7 = vld [vmem:[%s3629_s15 + $0x28] sm:$0xff]  ;;  %v1661_v8 = vld [vmem:[%s3629_s15 + $0x38] sm:$0xff] }
 0x145   :  { %v1140_v10 = vadd.f32 %v2120_v6, %v1978_v41  ;;  %v2144_v13 = vpop.f32.mrb[11].mxu1  ;;  %v1655_v41 = vld [vmem:[%s3629_s15 + $0x8] sm:$0xff]  ;;  %v1656_v6 = vld [vmem:[%s3629_s15 + $0x10] sm:$0xff] }
 0x146   :  { %2311 = vmatpush1.bf16.msra.mxu0 %v2310_v4  ;;  %v1654_v4 = vld [vmem:[%s3629_s15] sm:$0xff]  ;;  %v2344_v5 = vpack.c.bf16 %v1657_v3, %v1655_v41  ;;  %v1660_v12 = vld [vmem:[%s3629_s15 + $0x30] sm:$0xff]  ;;  %v1663_v13 = vld [vmem:[%s3629_s15 + $0x48] sm:$0xff] }
 0x147   :  { %v3330_v14 = vadd.f32 %v2142_v11, %v1140_v10  ;;  %v2346_v9 = vpack.c.bf16 %v1656_v6, %v1654_v4  ;;  %v2348_v10 = vpack.c.bf16 %v1661_v8, %v1659_v7  ;;  %v1658_v11 = vld [vmem:[%s3629_s15 + $0x20] sm:$0xff]  ;;  %v2352_v17 = vpack.c.bf16 %v1665_v15, %v1663_v13  ;;  %v1787_v6 = vld [vmem:[%s3631_s17 + $0x90] sm:$0xff]  ;;  %v1788_v7 = vld [vmem:[%s3631_s17 + $0x98] sm:$0xff] }
 0x148   :  { %2345 = vmatprep.subr.bf16.mxu1 %v2344_v5  ;;  %v2350_v16 = vpack.c.bf16 %v1660_v12, %v1658_v11  ;;  %v1769_v4 = vld [vmem:[%s3631_s17] sm:$0xff]  ;;  %v1770_v5 = vld [vmem:[%s3631_s17 + $0x8] sm:$0xff]  ;;  %v1771_v11 = vld [vmem:[%s3631_s17 + $0x10] sm:$0xff] }
 0x149   :  { %1504 = vmatmul.mubr.f32.vlgmr.msra.gmra.mrb[12].mxu0 %v3330_v14  ;;  %v1772_v12 = vld [vmem:[%s3631_s17 + $0x18] sm:$0xff]  ;;  %v1789_v13 = vld [vmem:[%s3631_s17 + $0xa0] sm:$0xff] }
 0x14a   :  { %v2382_v15 = vpack.c.bf16 %v1772_v12, %v1771_v11 }
 0x21c   :  { %v1505_v49 = vpop.f32.mrb[12].mxu0 }
 0x21d   :  { %v2408_v50 = vadd.f32 %v1505_v49, %v1293_v47  ;;  %v1507_v51 = vpop.f32.mrb[13].mxu0  ;;  %v1676_v47 = vld [vmem:[%s3629_s15 + $0xb0] sm:$0xff]  ;;  %v1679_v49 = vld [vmem:[%s3629_s15 + $0xc8] sm:$0xff] }
 0x21e   :  { %v2409_v52 = vadd.f32 %v1507_v51, %v1297_v48  ;;  %v2366_v48 = vpack.c.bf16 %v1676_v47, %v1674_v45  ;;  %v1678_v51 = vld [vmem:[%s3629_s15 + $0xc0] sm:$0xff] }
 0x220   :  { %2520 = vtanh.f32 %v2409_v52 }
 0x221   :  { %2522 = vtanh.f32 %v2408_v50  ;;  %v1681_v50 = vld [vmem:[%s3629_s15 + $0xd8] sm:$0xff] }
 0x222   :  { %v2368_v52 = vpack.c.bf16 %v1681_v50, %v1679_v49  ;;  %v1782_v49 = vld [vmem:[%s3631_s17 + $0x68] sm:$0xff] }
 0x22a   :  { %v2521_v53 = vpop.eup %2520 }
 0x22b   :  { %v2523_v54 = vpop.eup %2522  ;;  %1617 = vmatprep.mubr.f32.mxu1 %v2521_v53  ;;  %v1680_v53 = vld [vmem:[%s3629_s15 + $0xd0] sm:$0xff] }
 0x22c   :  { %1618 = vmatmul.mubr.f32.vlgmr.msra.gmra.mrb[12].mxu1 %v2523_v54  ;;  %v2370_v54 = vpack.c.bf16 %v1680_v53, %v1678_v51  ;;  %v1799_v51 = vld [vmem:[%s3631_s17 + $0xf0] sm:$0xff] }
 0x22d   :  { %1762 = vmatprep.mubr.f32.mxu1 %v2557_v43  ;;  %v2559_v43 = vmov 0   ;;  %2347 = vmatpush1.bf16.msra.mxu1 %v2346_v9 }
 0x22e   :  { %2421 = vset.pattern.permute.xlu1 %v2559_v43  ;;  %2349 = vmatprep.subr.bf16.mxu1 %v2348_v10  ;;  %v2380_v10 = vpack.c.bf16 %v1788_v7, %v1787_v6 }
 0x231   :  { %2351 = vmatpush1.bf16.msra.mxu1 %v2350_v16 }
 0x232   :  { %2353 = vmatprep.subr.bf16.mxu1 %v2352_v17  ;;  %v1773_v17 = vld [vmem:[%s3631_s17 + $0x20] sm:$0xff] }
 0x233   :  { %v2386_v21 = vpack.c.bf16 %v1774_v18, %v1773_v17 }
 0x235   :  { %2355 = vmatpush1.bf16.msra.mxu1 %v2354_v24  ;;  %v2388_v24 = vpack.c.bf16 %v1792_v20, %v1791_v19 }
 0x236   :  { %2357 = vmatprep.subr.bf16.mxu1 %v2356_v25  ;;  %v1775_v25 = vld [vmem:[%s3631_s17 + $0x30] sm:$0xff] }
 0x237   :  { %v2390_v29 = vpack.c.bf16 %v1776_v26, %v1775_v25 }
 0x239   :  { %2359 = vmatpush1.bf16.msra.mxu1 %v2358_v30  ;;  %v2392_v30 = vpack.c.bf16 %v1794_v28, %v1793_v27 }
 0x23a   :  { %2361 = vmatprep.subr.bf16.mxu1 %v2360_v31  ;;  %v1777_v31 = vld [vmem:[%s3631_s17 + $0x40] sm:$0xff] }
 0x23b   :  { %v2394_v35 = vpack.c.bf16 %v1778_v32, %v1777_v31 }
 0x23d   :  { %2363 = vmatpush1.bf16.msra.mxu1 %v2362_v37  ;;  %v2396_v37 = vpack.c.bf16 %v1796_v34, %v1795_v33 }
 0x23e   :  { %2365 = vmatprep.subr.bf16.mxu1 %v2364_v38  ;;  %v1779_v38 = vld [vmem:[%s3631_s17 + $0x50] sm:$0xff] }
 0x241   :  { %2367 = vmatpush1.bf16.msra.mxu1 %v2366_v48  ;;  %v1781_v48 = vld [vmem:[%s3631_s17 + $0x60] sm:$0xff] }
 0x242   :  { %2369 = vmatprep.subr.bf16.mxu1 %v2368_v52  ;;  %v2402_v50 = vpack.c.bf16 %v1782_v49, %v1781_v48  ;;  %v1800_v52 = vld [vmem:[%s3631_s17 + $0xf8] sm:$0xff] }
 0x243   :  { %v2404_v53 = vpack.c.bf16 %v1800_v52, %v1799_v51 }
 0x245   :  { %2371 = vmatpush1.bf16.msra.mxu1 %v2370_v54  ;;  %v1783_v54 = vld [vmem:[%s3631_s17 + $0x70] sm:$0xff] }
 0x2ff   :  { %v2178_v55 = vpop.f32.mrb[12].mxu1 }
 0x300   :  { %v2179_v56 = vpop.f32.mrb[13].mxu1 }
 0x301   :  { %v2180_v58 = vadd.f32 %v2179_v56, %v2178_v55  ;;  %v2560_v55 = vmov 1   ;;  %v1683_v56 = vld [vmem:[%s3629_s15 + $0xe8] sm:$0xff] }
 0x303   :  { %v1620_v59 = vadd.f32 %v2180_v58, %v2012_v57  ;;  %v1685_v57 = vld [vmem:[%s3629_s15 + $0xf8] sm:$0xff] }
 0x304   :  { %v2372_v58 = vpack.c.bf16 %v1685_v57, %v1683_v56  ;;  %v1686_v57 = vld [vmem:[%s3630_s16] sm:$0x3] }
 0x305   :  { %v1624_v60 = vsel %vm1623_vm0, %v1620_v59, -inf }
 0x306   :  { %1625 = vmax.xlane.f32.xlu0 %v1624_v60  ;;  %v1684_v60 = vld [vmem:[%s3629_s15 + $0xf0] sm:$0xff]  ;;  %2373 = vmatprep.subr.bf16.mxu1 %v2372_v58  ;;  %v1695_v58 = vrot.slane %v1686_v57, %v1296_v46 }
 0x393   :  { %v1626_v61 = vpop.xlane.xlu0 %1625 }
 0x394   :  { %v1627_v62 = vsub.f32 %v1620_v59, %v1626_v61  ;;  %v1682_v59 = vld [vmem:[%s3629_s15 + $0xe0] sm:$0xff] }
 0x395   :  { %v2374_v61 = vpack.c.bf16 %v1684_v60, %v1682_v59  ;;  %v1691_v59 = vrot.slane %v1686_v57, %v1292_v44 }
 0x396   :  { %v1628_v63 = vmul.f32 1.442695, %v1627_v62  ;;  %v1785_v62 = vld [vmem:[%s3631_s17 + $0x80] sm:$0xff] }
 0x397   :  { %2375 = vmatpush1.bf16.msra.mxu1 %v2374_v61 }
 0x398   :  { %2524 = vpow2.f32 %v1628_v63  ;;  %v1786_v63 = vld [vmem:[%s3631_s17 + $0x88] sm:$0xff] }
 0x3a2   :  { %v2525_v0 = vpop.eup %2524 }
 0x3a3   :  { %v1630_v1 = vsel %vm1623_vm0, %v2525_v0, 0.0 }
 0x3a4   :  { %1631 = vadd.xlane.f32.xlu0 %v1630_v1 }
 0x431   :  { %v1632_v39 = vpop.xlane.xlu0 %1631 }
 0x432   :  { %2526 = vrcp.f32 %v1632_v39  ;;  %v1780_v39 = vld [vmem:[%s3631_s17 + $0x58] sm:$0xff] }
 0x433   :  { %v2398_v45 = vpack.c.bf16 %v1780_v39, %v1779_v38 }
 0x43c   :  { %v2527_v40 = vpop.eup %2526 }
 0x43d   :  { %v1634_v42 = vmul.f32 %v2527_v40, %v2525_v0  ;;  %v2376_v0 = vpack.c.bf16 %v1786_v63, %v1785_v62  ;;  %v1797_v40 = vld [vmem:[%s3631_s17 + $0xe0] sm:$0xff] }
 0x43f   :  { %1649 = vperm.xlu0 %2423, %v1634_v42   ;;  %1637 = vperm.xlu1 %2421, %v1634_v42  }
 0x440   :  { %2377 = vmatprep.subr.bf16.mxu1 %v2376_v0 }
 0x443   :  { %2422 = vset.pattern.permute.xlu1 %v2560_v55  ;;  %v1784_v55 = vld [vmem:[%s3631_s17 + $0x78] sm:$0xff] }
 0x444   :  { %1643 = vperm.xlu1 %2422, %v1634_v42   ;;  %v1798_v42 = vld [vmem:[%s3631_s17 + $0xe8] sm:$0xff]  ;;  %v2406_v56 = vpack.c.bf16 %v1784_v55, %v1783_v54 }
 0x445   :  { %v2400_v47 = vpack.c.bf16 %v1798_v42, %v1797_v40 }
 0x4be   :  { %v1638_v1 = vpop.permute.xlu1 %1637  ;;  %v1650_v2 = vpop.permute.xlu0 %1649 }
 0x4bf   :  { %v1640_v41 = vmul.f32 %v1638_v1, %v3142_v23  ;;  %v1652_v23 = vmul.f32 %v1650_v2, %v3330_v14  ;;  %v1790_v14 = vld [vmem:[%s3631_s17 + $0xa8] sm:$0xff]  ;;  %v2013_v1 = vld [vmem:[%s3632_s18] ss:$0 sm:$0xff]  ;;  %s2532_s18 = scalar_lea.vmem %s1901_s30, 32 }
 0x4c0   :  { %v2384_v16 = vpack.c.bf16 %v1790_v14, %v1789_v13  ;;  %p2533_p0 = scmp.ne.s32.totalorder %s1901_s30, %s2532_s18  ;;  %p2538_p2 = scmp.lt.s32.totalorder %s2532_s18, %s2532_s18 }
 0x4c2   :  { %p2539_p3 = por %p2538_p2, %p2537_p1 }
 0x4c3   :  { %v1644_v43 = vpop.permute.xlu1 %1643 }
 0x4c4   :  { %v1646_v3 = vmul.f32 %v1644_v43, %v3245_v22  ;;  %v2378_v22 = vpack.c.bf16 %v1770_v5, %v1769_v4  ;;  %p2540_p4 = pnand %p2539_p3, %p2533_p0 }
 0x4c6   :  { %v1647_v8 = vadd.f32 %v1646_v3, %v1640_v41 }
 0x4c8   :  { %v1653_v9 = vadd.f32 %v1652_v23, %v1647_v8 }
 0x4ca   :  { %1763 = vmatmul.mubr.f32.vlgmr.msra.gmra.mrb[14].mxu1 %v1653_v9 }
 0x4cb   :  { %2379 = vmatpush3.bf16.msra.mxu1 %v2378_v22 }
 0x4cc   :  { %2381 = vmatprep.subr.bf16.mxu1 %v2380_v10 }
 0x4cf   :  { %2383 = vmatpush3.bf16.msra.mxu1 %v2382_v15 }
 0x4d0   :  { %2385 = vmatprep.subr.bf16.mxu1 %v2384_v16 }
 0x4d3   :  { %2387 = vmatpush3.bf16.msra.mxu1 %v2386_v21 }
 0x4d4   :  { %2389 = vmatprep.subr.bf16.mxu1 %v2388_v24 }
 0x4d7   :  { %2391 = vmatpush3.bf16.msra.mxu1 %v2390_v29 }
 0x4d8   :  { %2393 = vmatprep.subr.bf16.mxu1 %v2392_v30 }
 0x4db   :  { %2395 = vmatpush3.bf16.msra.mxu1 %v2394_v35 }
 0x4dc   :  { %2397 = vmatprep.subr.bf16.mxu1 %v2396_v37 }
 0x4df   :  { %2399 = vmatpush3.bf16.msra.mxu1 %v2398_v45 }
 0x4e0   :  { %2401 = vmatprep.subr.bf16.mxu1 %v2400_v47 }
 0x4e3   :  { %2403 = vmatpush3.bf16.msra.mxu1 %v2402_v50 }
 0x4e4   :  { %2405 = vmatprep.subr.bf16.mxu1 %v2404_v53 }
 0x4e7   :  { %2407 = vmatpush3.bf16.msra.mxu1 %v2406_v56 }
 0x59d   :  { %v1764_v60 = vpop.f32.mrb[14].mxu1 }
 0x59e   :  { %v1766_v61 = vpop.f32.mrb[15].mxu1  ;;  %v1765_v63 = vadd.f32 %v1764_v60, %v1691_v59 }
 0x59f   :  { %v1767_v62 = vadd.f32 %v1766_v61, %v1695_v58 }
 0x5a1   :  { %1872 = vmatprep.mubr.f32.mxu1 %v1767_v62 }
 0x5a2   :  { %1873 = vmatmul.mubr.f32.vlgmr.msra.gmra.mrb[16].mxu1 %v1765_v63 }
 0x675   :  { %v2213_v0 = vpop.f32.mrb[16].mxu1 }
 0x676   :  { %v2214_v2 = vpop.f32.mrb[17].mxu1 }
 0x677   :  { %v2215_v43 = vadd.f32 %v2214_v2, %v2213_v0 }
 0x679   :  { %v1875_v41 = vadd.f32 %v2215_v43, %v2013_v1 }
 0x67b   :  { %v1878_v3 = vsub.f32 0.0, %v1875_v41 }
 0x67d   :  { %v1879_v4 = vmul.f32 1.442695, %v1878_v3 }
 0x67f   :  { %2528 = vpow2.f32 %v1879_v4 }
 0x689   :  { %v2529_v46 = vpop.eup %2528 }
 0x68a   :  { %v1881_v36 = vadd.f32 1.0, %v2529_v46 }
 0x68c   :  { %2530 = vrcp.f32 %v1881_v36 }
 0x696   :  { %v2531_v44 = vpop.eup %2530 }
 0x697   :  { %1885 = vst.msk [vmem:[%s3633_s19] sm:$0x3] %vm1884_vm1, %v2531_v44  ;;  %1887 = vrot.lane.b32.xlu1 %v2531_v44, %s2561_s6 }
 0x709   :  { %v1888_v5 = vpop.permute.xlu1 %1887 }
 0x70a   :  { %1891 = vst.msk [vmem:[#allocation2] sm:$0x3] %vm1890_vm2, %v1888_v5 }
 0x70b   :  { %2543 = shalt.err (!%p2540_p4)
}
 0x70c   :  { %s2544_s10 = scalar_lea.hbm %s3634_s20, 32 }
 0x70d   :  { %p2545_p5 = scmp.ne.s32.totalorder %s3634_s20, %s2544_s10  ;;  %p2548_p6 = scmp.lt.u32.totalorder %s2544_s10, %s3634_s20 }
 0x70f   :  { %p2550_p7 = pnand %p2548_p6, %p2545_p5 }
 0x711   :  { %2553 = shalt.err (!%p2550_p7)
}
 0x712   :  { %1903 = dma.vmem_to_hbm [thread:$0]  %s1901_s30, 32, %s3634_s20, [#allocation3]  }
 0x713   :  { %2554 = dma.done.wait [#allocation3], 32  }
 0x714   :  { %2555 = vsyncadd [#allocation3], 4294967264 }
 0x715   :  { %1909 = vsyncpa [#allocation3], 1 }

</bundles_post_ra>
